<compile_context>
chip_gen: v7x
topology: tpu7x:2x2x1
jax: 0.10.0
libtpu: 0.0.40
codegen_flags: <defaults>
</compile_context>

<pallas_src>
import functools

import jax
import jax.numpy as jnp
from jax.experimental import pallas as pl
from jax.experimental.pallas import tpu as pltpu


def _rope_kernel(q_ref, k_ref, cos_ref, sin_ref, q_out_ref, k_out_ref, *,
                 use_xlu_roll: bool):
    """One grid step: q/k blocks (tbh, ts, D); cos/sin blocks (1, ts, D).

    sin_ref holds a sign-folded sin cache: sin_signed = [-sin | +sin], so
        rotate_half(x) * sin == roll(x, D//2, lane-axis) * sin_signed
    (valid only for the non-interleaved / rotate_half RoPE cache layout).
    """
    q = q_ref[...].astype(jnp.float32)
    k = k_ref[...].astype(jnp.float32)
    cos = cos_ref[...]        # float32
    sin_s = sin_ref[...]      # float32, sign-folded

    d = q.shape[-1]
    half = d // 2
    lane_axis = q.ndim - 1    # pltpu.roll requires a non-negative axis index

    if use_xlu_roll:
        # Lane-aligned head dim: swap halves with an XLU lane rotation (issues
        # in a separate VLIW slot from the VPU multiplies -> effectively free).
        q_sw = pltpu.roll(q, shift=half, axis=lane_axis)
        k_sw = pltpu.roll(k, shift=half, axis=lane_axis)
    else:
        # Fallback for head dims that are not a multiple of 128 lanes (or if
        # the roll primitive is unavailable in the current execution mode).
        def swap_halves(x):
            return jnp.concatenate([x[..., half:], x[..., :half]], axis=-1)
        q_sw = swap_halves(q)
        k_sw = swap_halves(k)

    q_out_ref[...] = (q * cos + q_sw * sin_s).astype(q_out_ref.dtype)
    k_out_ref[...] = (k * cos + k_sw * sin_s).astype(k_out_ref.dtype)


@functools.lru_cache(maxsize=64)
def rope_cos_sin_signed(seq_len: int, dim: int, base: float = 10000.0):
    """Replicates RotaryPositionalEmbedding._update_cached, but returns the sin
    cache with the rotate_half sign already folded in. Both [1, S, D], f32.
    Cached per (S, D, base) so repeated per-layer calls reuse the device arrays.
    NOTE: non-interleaved (rotate_half / concat) RoPE layout only."""
    inv_freq = 1.0 / (base ** (jnp.arange(0, dim, 2, dtype=jnp.float32) / dim))
    t = jnp.arange(seq_len, dtype=jnp.float32)
    freqs = jnp.einsum("i,j->ij", t, inv_freq)          # [S, D/2]
    emb = jnp.concatenate([freqs, freqs], axis=-1)      # [S, D]
    cos = jnp.cos(emb)
    sin = jnp.sin(emb)
    half = dim // 2
    sign = jnp.concatenate(
        [-jnp.ones((half,), jnp.float32), jnp.ones((half,), jnp.float32)])
    return cos[None], (sin * sign)[None]                # [1, S, D] each


def _round_up(x: int, m: int) -> int:
    return ((x + m - 1) // m) * m


def _choose_tiles(bh: int, s: int, d: int, itemsize: int,
                  target_block_bytes: int):
    """Pick (tbh, ts) so one q/k block is ~target_block_bytes, ts respects the
    dtype's sublane packing, and the grid has >= 2 steps when possible (so both
    v7x TensorCores get work under ("parallel", "parallel") semantics)."""
    pack = max(8, 32 // itemsize)          # f32: 8, bf16: 16, int8/fp8: 32
    row_bytes = d * itemsize
    rows_target = max(pack, target_block_bytes // row_bytes)
    if s <= rows_target:
        ts = s                                                # full seq extent
        tbh = int(max(1, min(bh, rows_target // max(s, 1))))
    else:
        tbh = 1
        ts = int(min(s, max(pack, (rows_target // pack) * pack)))

    # Avoid a degenerate single-step grid: split BH (preferred) or S.
    if pl.cdiv(s, ts) * pl.cdiv(bh, tbh) == 1:
        if bh >= 2:
            tbh = (bh + 1) // 2
        elif s >= 2 * pack:
            ts = _round_up((s + 1) // 2, pack)
    return tbh, ts


def _build_rope_call(BH, S, D, q_dtype, k_dtype, tbh, ts, use_xlu_roll,
                     donate_inputs, vmem_limit_bytes):
    # S-tiles outermost: the cos/sin block index is constant across the inner
    # BH loop, so Pallas does not re-DMA it between those steps.
    grid = (pl.cdiv(S, ts), pl.cdiv(BH, tbh))
    qk_spec = pl.BlockSpec((tbh, ts, D), lambda s_i, bh_i: (bh_i, s_i, 0))
    cs_spec = pl.BlockSpec((1, ts, D), lambda s_i, bh_i: (0, s_i, 0))
    kernel = functools.partial(_rope_kernel, use_xlu_roll=use_xlu_roll)
    return pl.pallas_call(
        kernel,
        out_shape=(
            jax.ShapeDtypeStruct((BH, S, D), q_dtype),
            jax.ShapeDtypeStruct((BH, S, D), k_dtype),
        ),
        grid_spec=pltpu.PrefetchScalarGridSpec(
            num_scalar_prefetch=0,
            grid=grid,
            in_specs=[qk_spec, qk_spec, cs_spec, cs_spec],
            out_specs=[qk_spec, qk_spec],
        ),
        input_output_aliases={0: 0, 1: 1} if donate_inputs else {},
        compiler_params=pltpu.CompilerParams(
            dimension_semantics=("parallel", "parallel"),
            vmem_limit_bytes=vmem_limit_bytes,
        ),
    )


def apply_rotary_pos_emb(q, k, base: float = 10000.0,
                         target_block_bytes: int = 4 * 1024 * 1024,
                         donate_inputs: bool = False):
    """q, k: [B, H, S, D]. Returns (q_rot, k_rot) with same shape/dtype."""
    B, H, S, D = q.shape
    assert k.shape == (B, H, S, D)
    assert D % 2 == 0

    BH = B * H
    q3 = q.reshape(BH, S, D)
    k3 = k.reshape(BH, S, D)
    cos, sin_signed = rope_cos_sin_signed(S, D, float(base))  # [1, S, D] f32

    tbh, ts = _choose_tiles(BH, S, D, q.dtype.itemsize, target_block_bytes)

    # Derive a scoped-VMEM budget from the actual tiles: 4 q/k streams x 2
    # buffers + 2 cos/sin streams x 2 buffers, with 2x headroom for the f32
    # upcast / roll temporaries; capped at 56 MiB to stay safe on v7x (64 MiB).
    block_bytes = tbh * ts * D * q.dtype.itemsize
    cs_bytes = ts * D * 4
    vmem_needed = 4 * 2 * block_bytes + 2 * 2 * cs_bytes
    vmem_limit = int(min(56 * 1024 * 1024,
                         max(32 * 1024 * 1024, 2 * vmem_needed)))

    use_xlu_roll = (D % 128 == 0)
    call = _build_rope_call(BH, S, D, q.dtype, k.dtype, tbh, ts,
                            use_xlu_roll, donate_inputs, vmem_limit)
    try:
        q_rot, k_rot = call(q3, k3, cos, sin_signed)
    except Exception:
        # pltpu.roll may be unavailable in some execution modes (e.g. older
        # interpreters); the concat fallback is semantically identical.
        if not use_xlu_roll:
            raise
        call = _build_rope_call(BH, S, D, q.dtype, k.dtype, tbh, ts,
                                False, donate_inputs, vmem_limit)
        q_rot, k_rot = call(q3, k3, cos, sin_signed)

    return q_rot.reshape(B, H, S, D), k_rot.reshape(B, H, S, D)


def _reference(q, k, base: float = 10000.0):
    """Pure-JAX reference mirroring the PyTorch module exactly."""
    S, D = q.shape[-2], q.shape[-1]
    inv_freq = 1.0 / (base ** (jnp.arange(0, D, 2, dtype=jnp.float32) / D))
    t = jnp.arange(S, dtype=jnp.float32)
    freqs = jnp.einsum("i,j->ij", t, inv_freq)
    emb = jnp.concatenate([freqs, freqs], axis=-1)
    cos = jnp.cos(emb)[None, None]
    sin = jnp.sin(emb)[None, None]
    half = D // 2

    def rotate_half(x):
        return jnp.concatenate([-x[..., half:], x[..., :half]], axis=-1)

    q_out = (q * cos + rotate_half(q) * sin).astype(q.dtype)
    k_out = (k * cos + rotate_half(k) * sin).astype(k.dtype)
    return q_out, k_out


if __name__ == "__main__":
    key = jax.random.PRNGKey(0)
    kq, kk = jax.random.split(key)

    # Typical RoPE head_dim = 128 -> lane-dense (unmasked) stores.
    B, H, S, D = 2, 4, 64, 128
    q = jax.random.normal(kq, (B, H, S, D), dtype=jnp.float32)
    k = jax.random.normal(kk, (B, H, S, D), dtype=jnp.float32)

    q_ref, k_ref = _reference(q, k)

    # 1) Default tiling (guard splits BH so the grid has >= 2 steps).
    q_rot, k_rot = apply_rotary_pos_emb(q, k)
    jax.block_until_ready((q_rot, k_rot))
    assert jnp.allclose(q_rot, q_ref, atol=1e-5, rtol=1e-5)
    assert jnp.allclose(k_rot, k_ref, atol=1e-5, rtol=1e-5)

    # 2) Tiny block budget to force a multi-step (S-tiles x BH-tiles) grid and
    #    exercise the tiled / cos-sin-reuse path.
    q_rot2, k_rot2 = apply_rotary_pos_emb(q, k, target_block_bytes=8 * 1024)
    jax.block_until_ready((q_rot2, k_rot2))
    assert jnp.allclose(q_rot2, q_ref, atol=1e-5, rtol=1e-5)
    assert jnp.allclose(k_rot2, k_ref, atol=1e-5, rtol=1e-5)

    # 3) bf16 inputs: exercises the dtype-aware (16-row) sublane packing and
    #    the f32-compute / bf16-store path.
    q_bf = q.astype(jnp.bfloat16)
    k_bf = k.astype(jnp.bfloat16)
    q_ref_bf, k_ref_bf = _reference(q_bf, k_bf)
    q_rot3, k_rot3 = apply_rotary_pos_emb(q_bf, k_bf)
    jax.block_until_ready((q_rot3, k_rot3))
    assert jnp.allclose(q_rot3.astype(jnp.float32), q_ref_bf.astype(jnp.float32),
                        atol=3e-2, rtol=3e-2)
    assert jnp.allclose(k_rot3.astype(jnp.float32), k_ref_bf.astype(jnp.float32),
                        atol=3e-2, rtol=3e-2)

    print("KERNEL_OK")
</pallas_src>

<mosaic_0001>
module attributes {stable_mosaic.version = 11 : i64} {
  func.func @_rope_kernel(%arg0: i32, %arg1: i32, %arg2: memref<4x64x128xf32, #tpu.memory_space<vmem>>, %arg3: memref<4x64x128xf32, #tpu.memory_space<vmem>>, %arg4: memref<1x64x128xf32, #tpu.memory_space<vmem>>, %arg5: memref<1x64x128xf32, #tpu.memory_space<vmem>>, %arg6: memref<4x64x128xf32, #tpu.memory_space<vmem>>, %arg7: memref<4x64x128xf32, #tpu.memory_space<vmem>>) attributes {dimension_semantics = [#tpu.dimension_semantics<parallel>, #tpu.dimension_semantics<parallel>], iteration_bounds = array<i64: 1, 2>, scalar_prefetch = 0 : i64, scratch_operands = 0 : i64, tpu.core_type = #tpu.core_type<tc>, window_params = [{transform_indices = @transform_0, window_bounds = array<i64: 4, 64, 128>}, {transform_indices = @transform_1, window_bounds = array<i64: 4, 64, 128>}, {transform_indices = @transform_2, window_bounds = array<i64: 1, 64, 128>}, {transform_indices = @transform_3, window_bounds = array<i64: 1, 64, 128>}, {transform_indices = @transform_4, window_bounds = array<i64: 4, 64, 128>}, {transform_indices = @transform_5, window_bounds = array<i64: 4, 64, 128>}]} {
    %c0 = arith.constant 0 : index
    %c0_0 = arith.constant 0 : index
    %c0_1 = arith.constant 0 : index
    %0 = vector.load %arg2[%c0, %c0_0, %c0_1] : memref<4x64x128xf32, #tpu.memory_space<vmem>>, vector<4x64x128xf32>
    %c0_2 = arith.constant 0 : index
    %c0_3 = arith.constant 0 : index
    %c0_4 = arith.constant 0 : index
    %1 = vector.load %arg3[%c0_2, %c0_3, %c0_4] : memref<4x64x128xf32, #tpu.memory_space<vmem>>, vector<4x64x128xf32>
    %c0_5 = arith.constant 0 : index
    %c0_6 = arith.constant 0 : index
    %c0_7 = arith.constant 0 : index
    %2 = vector.load %arg4[%c0_5, %c0_6, %c0_7] : memref<1x64x128xf32, #tpu.memory_space<vmem>>, vector<1x64x128xf32>
    %c0_8 = arith.constant 0 : index
    %c0_9 = arith.constant 0 : index
    %c0_10 = arith.constant 0 : index
    %3 = vector.load %arg5[%c0_8, %c0_9, %c0_10] : memref<1x64x128xf32, #tpu.memory_space<vmem>>, vector<1x64x128xf32>
    %c64_i32 = arith.constant 64 : i32
    %4 = tpu.dynamic_rotate %0 by %c64_i32 dim 2 : vector<4x64x128xf32>, i32 -> vector<4x64x128xf32>
    %c64_i32_11 = arith.constant 64 : i32
    %5 = tpu.dynamic_rotate %1 by %c64_i32_11 dim 2 : vector<4x64x128xf32>, i32 -> vector<4x64x128xf32>
    %6 = vector.broadcast %2 : vector<1x64x128xf32> to vector<4x64x128xf32>
    %7 = arith.mulf %0, %6 : vector<4x64x128xf32>
    %8 = vector.broadcast %3 : vector<1x64x128xf32> to vector<4x64x128xf32>
    %9 = arith.mulf %4, %8 : vector<4x64x128xf32>
    %10 = arith.addf %7, %9 : vector<4x64x128xf32>
    %c0_12 = arith.constant 0 : index
    %c0_13 = arith.constant 0 : index
    %c0_14 = arith.constant 0 : index
    %11 = vector.load %arg6[%c0_12, %c0_13, %c0_14] : memref<4x64x128xf32, #tpu.memory_space<vmem>>, vector<4x64x128xf32>
    tpu.vector_store %arg6[%c0_12, %c0_13, %c0_14], %10 {strides = array<i32>} : memref<4x64x128xf32, #tpu.memory_space<vmem>>, vector<4x64x128xf32>,
    %12 = vector.broadcast %2 : vector<1x64x128xf32> to vector<4x64x128xf32>
    %13 = arith.mulf %1, %12 : vector<4x64x128xf32>
    %14 = vector.broadcast %3 : vector<1x64x128xf32> to vector<4x64x128xf32>
    %15 = arith.mulf %5, %14 : vector<4x64x128xf32>
    %16 = arith.addf %13, %15 : vector<4x64x128xf32>
    %c0_15 = arith.constant 0 : index
    %c0_16 = arith.constant 0 : index
    %c0_17 = arith.constant 0 : index
    %17 = vector.load %arg7[%c0_15, %c0_16, %c0_17] : memref<4x64x128xf32, #tpu.memory_space<vmem>>, vector<4x64x128xf32>
    tpu.vector_store %arg7[%c0_15, %c0_16, %c0_17], %16 {strides = array<i32>} : memref<4x64x128xf32, #tpu.memory_space<vmem>>, vector<4x64x128xf32>,
    return
  }
  func.func @transform_0(%arg0: i32, %arg1: i32) -> (i32, i32, i32) {
    %c0_i32 = arith.constant 0 : i32
    %c0_i32_0 = arith.constant 0 : i32
    return %arg1, %arg0, %c0_i32 : i32, i32, i32
  }
  func.func @transform_1(%arg0: i32, %arg1: i32) -> (i32, i32, i32) {
    %c0_i32 = arith.constant 0 : i32
    %c0_i32_0 = arith.constant 0 : i32
    return %arg1, %arg0, %c0_i32 : i32, i32, i32
  }
  func.func @transform_2(%arg0: i32, %arg1: i32) -> (i32, i32, i32) {
    %c0_i32 = arith.constant 0 : i32
    %c0_i32_0 = arith.constant 0 : i32
    %c0_i32_1 = arith.constant 0 : i32
    return %c0_i32, %arg0, %c0_i32_0 : i32, i32, i32
  }
  func.func @transform_3(%arg0: i32, %arg1: i32) -> (i32, i32, i32) {
    %c0_i32 = arith.constant 0 : i32
    %c0_i32_0 = arith.constant 0 : i32
    %c0_i32_1 = arith.constant 0 : i32
    return %c0_i32, %arg0, %c0_i32_0 : i32, i32, i32
  }
  func.func @transform_4(%arg0: i32, %arg1: i32) -> (i32, i32, i32) {
    %c0_i32 = arith.constant 0 : i32
    %c0_i32_0 = arith.constant 0 : i32
    return %arg1, %arg0, %c0_i32 : i32, i32, i32
  }
  func.func @transform_5(%arg0: i32, %arg1: i32) -> (i32, i32, i32) {
    %c0_i32 = arith.constant 0 : i32
    %c0_i32_0 = arith.constant 0 : i32
    return %arg1, %arg0, %c0_i32 : i32, i32, i32
  }
}

module attributes {stable_mosaic.version = 11 : i64} {
  func.func @_rope_kernel(%arg0: i32, %arg1: i32, %arg2: memref<4x64x128xf32, #tpu.memory_space<vmem>>, %arg3: memref<4x64x128xf32, #tpu.memory_space<vmem>>, %arg4: memref<1x64x128xf32, #tpu.memory_space<vmem>>, %arg5: memref<1x64x128xf32, #tpu.memory_space<vmem>>, %arg6: memref<4x64x128xf32, #tpu.memory_space<vmem>>, %arg7: memref<4x64x128xf32, #tpu.memory_space<vmem>>) attributes {dimension_semantics = [#tpu.dimension_semantics<parallel>, #tpu.dimension_semantics<parallel>], iteration_bounds = array<i64: 1, 2>, scalar_prefetch = 0 : i64, scratch_operands = 0 : i64, tpu.core_type = #tpu.core_type<tc>, window_params = [{transform_indices = @transform_0, window_bounds = array<i64: 4, 64, 128>}, {transform_indices = @transform_1, window_bounds = array<i64: 4, 64, 128>}, {transform_indices = @transform_2, window_bounds = array<i64: 1, 64, 128>}, {transform_indices = @transform_3, window_bounds = array<i64: 1, 64, 128>}, {transform_indices = @transform_4, window_bounds = array<i64: 4, 64, 128>}, {transform_indices = @transform_5, window_bounds = array<i64: 4, 64, 128>}]} {
    %c0 = arith.constant 0 : index
    %c0_0 = arith.constant 0 : index
    %c0_1 = arith.constant 0 : index
    %0 = vector.load %arg2[%c0, %c0_0, %c0_1] : memref<4x64x128xf32, #tpu.memory_space<vmem>>, vector<4x64x128xf32>
    %c0_2 = arith.constant 0 : index
    %c0_3 = arith.constant 0 : index
    %c0_4 = arith.constant 0 : index
    %1 = vector.load %arg3[%c0_2, %c0_3, %c0_4] : memref<4x64x128xf32, #tpu.memory_space<vmem>>, vector<4x64x128xf32>
    %c0_5 = arith.constant 0 : index
    %c0_6 = arith.constant 0 : index
    %c0_7 = arith.constant 0 : index
    %2 = vector.load %arg4[%c0_5, %c0_6, %c0_7] : memref<1x64x128xf32, #tpu.memory_space<vmem>>, vector<1x64x128xf32>
    %c0_8 = arith.constant 0 : index
    %c0_9 = arith.constant 0 : index
    %c0_10 = arith.constant 0 : index
    %3 = vector.load %arg5[%c0_8, %c0_9, %c0_10] : memref<1x64x128xf32, #tpu.memory_space<vmem>>, vector<1x64x128xf32>
    %4 = vector.extract_strided_slice %0 {offsets = [0, 0, 64], sizes = [4, 64, 64], strides = [1, 1, 1]} : vector<4x64x128xf32> to vector<4x64x64xf32>
    %5 = vector.extract_strided_slice %0 {offsets = [0, 0, 0], sizes = [4, 64, 64], strides = [1, 1, 1]} : vector<4x64x128xf32> to vector<4x64x64xf32>
    %6 = tpu.concatenate %4, %5 in 2 : vector<4x64x64xf32>, vector<4x64x64xf32> -> vector<4x64x128xf32>
    %7 = vector.extract_strided_slice %1 {offsets = [0, 0, 64], sizes = [4, 64, 64], strides = [1, 1, 1]} : vector<4x64x128xf32> to vector<4x64x64xf32>
    %8 = vector.extract_strided_slice %1 {offsets = [0, 0, 0], sizes = [4, 64, 64], strides = [1, 1, 1]} : vector<4x64x128xf32> to vector<4x64x64xf32>
    %9 = tpu.concatenate %7, %8 in 2 : vector<4x64x64xf32>, vector<4x64x64xf32> -> vector<4x64x128xf32>
    %10 = vector.broadcast %2 : vector<1x64x128xf32> to vector<4x64x128xf32>
    %11 = arith.mulf %0, %10 : vector<4x64x128xf32>
    %12 = vector.broadcast %3 : vector<1x64x128xf32> to vector<4x64x128xf32>
    %13 = arith.mulf %6, %12 : vector<4x64x128xf32>
    %14 = arith.addf %11, %13 : vector<4x64x128xf32>
    %c0_11 = arith.constant 0 : index
    %c0_12 = arith.constant 0 : index
    %c0_13 = arith.constant 0 : index
    %15 = vector.load %arg6[%c0_11, %c0_12, %c0_13] : memref<4x64x128xf32, #tpu.memory_space<vmem>>, vector<4x64x128xf32>
    tpu.vector_store %arg6[%c0_11, %c0_12, %c0_13], %14 {strides = array<i32>} : memref<4x64x128xf32, #tpu.memory_space<vmem>>, vector<4x64x128xf32>,
    %16 = vector.broadcast %2 : vector<1x64x128xf32> to vector<4x64x128xf32>
    %17 = arith.mulf %1, %16 : vector<4x64x128xf32>
    %18 = vector.broadcast %3 : vector<1x64x128xf32> to vector<4x64x128xf32>
    %19 = arith.mulf %9, %18 : vector<4x64x128xf32>
    %20 = arith.addf %17, %19 : vector<4x64x128xf32>
    %c0_14 = arith.constant 0 : index
    %c0_15 = arith.constant 0 : index
    %c0_16 = arith.constant 0 : index
    %21 = vector.load %arg7[%c0_14, %c0_15, %c0_16] : memref<4x64x128xf32, #tpu.memory_space<vmem>>, vector<4x64x128xf32>
    tpu.vector_store %arg7[%c0_14, %c0_15, %c0_16], %20 {strides = array<i32>} : memref<4x64x128xf32, #tpu.memory_space<vmem>>, vector<4x64x128xf32>,
    return
  }
  func.func @transform_0(%arg0: i32, %arg1: i32) -> (i32, i32, i32) {
    %c0_i32 = arith.constant 0 : i32
    %c0_i32_0 = arith.constant 0 : i32
    return %arg1, %arg0, %c0_i32 : i32, i32, i32
  }
  func.func @transform_1(%arg0: i32, %arg1: i32) -> (i32, i32, i32) {
    %c0_i32 = arith.constant 0 : i32
    %c0_i32_0 = arith.constant 0 : i32
    return %arg1, %arg0, %c0_i32 : i32, i32, i32
  }
  func.func @transform_2(%arg0: i32, %arg1: i32) -> (i32, i32, i32) {
    %c0_i32 = arith.constant 0 : i32
    %c0_i32_0 = arith.constant 0 : i32
    %c0_i32_1 = arith.constant 0 : i32
    return %c0_i32, %arg0, %c0_i32_0 : i32, i32, i32
  }
  func.func @transform_3(%arg0: i32, %arg1: i32) -> (i32, i32, i32) {
    %c0_i32 = arith.constant 0 : i32
    %c0_i32_0 = arith.constant 0 : i32
    %c0_i32_1 = arith.constant 0 : i32
    return %c0_i32, %arg0, %c0_i32_0 : i32, i32, i32
  }
  func.func @transform_4(%arg0: i32, %arg1: i32) -> (i32, i32, i32) {
    %c0_i32 = arith.constant 0 : i32
    %c0_i32_0 = arith.constant 0 : i32
    return %arg1, %arg0, %c0_i32 : i32, i32, i32
  }
  func.func @transform_5(%arg0: i32, %arg1: i32) -> (i32, i32, i32) {
    %c0_i32 = arith.constant 0 : i32
    %c0_i32_0 = arith.constant 0 : i32
    return %arg1, %arg0, %c0_i32 : i32, i32, i32
  }
}

</mosaic_0001>

<bundles_post_ra>
// kernel: tpu_custom_call.1
= control target key start
LH: loop header
LB: loop body
LE: loop exit
PB: predicated region body
PF: predicated region fallthrough
CT: control target
= control target key end

     0   :  { %s2459_s0 = inlined_call_operand.hbm [shape: f32[8,64,128], index: 0, kind: input, shape index: {}]   ;;  %s2460_s1 = inlined_call_operand.hbm [shape: f32[8,64,128], index: 1, kind: input, shape index: {}]   ;;  %s2461_s2 = inlined_call_operand.hbm [shape: f32[1,64,128], index: 2, kind: input, shape index: {}]   ;;  %s2462_s3 = inlined_call_operand.hbm [shape: f32[1,64,128], index: 3, kind: input, shape index: {}]   ;;  %s2463_s4 = inlined_call_operand.hbm [shape: f32[8,64,128], index: 4, kind: output, shape index: {0}]   ;;  %s2464_s5 = inlined_call_operand.hbm [shape: f32[8,64,128], index: 5, kind: output, shape index: {1}]  }
   0x1   :  { %2496 = sst [smem:[#allocation46_spill]] %s2459_s0 }
   0x2   :  { %2497 = sst [smem:[#allocation47_spill]] %s2461_s2 }
   0x3   :  { %2498 = sst [smem:[#allocation48_spill]] %s2462_s3 }
   0x4   :  { %11 = vsyncpa [#allocation3], 0 }
   0x5   :  { %13 = vsyncpa [#allocation3 + $0x1], 0 }
   0x6   :  { %14 = vsyncpa [#allocation6], 0 }
   0x7   :  { %16 = vsyncpa [#allocation6 + $0x1], 0 }
   0x8   :  { %17 = vsyncpa [#allocation9], 0 }
   0x9   :  { %18 = vsyncpa [#allocation4], 0 }
   0xa   :  { %20 = vsyncpa [#allocation4 + $0x1], 0 }
   0xb   :  { %21 = vsyncpa [#allocation12], 0 }
   0xc   :  { %23 = vsyncpa [#allocation12 + $0x1], 0  ;;  %s1473_s18 = smov 0   ;;  %s1475_s19 = smov 0  }
   0xd   :  { %s1477_s20 = smov 0   ;;  %s1479_s21 = smov 0  }
   0xe   :  { %s1481_s22 = smov 0   ;;  %s1483_s23 = smov 0  }
   0xf LB: > { %2499 = sst [smem:[#allocation19_spill]] %s1426_s22  ;;  %s1504_s24 = sadd.s32 4294967295, %s1430_s23   ;;  %s1430_s23 = sphi %s1483_s23, %s29_s23   ;;  %s1426_s22 = sphi %s1481_s22, %s2572_s22   ;;  %s1422_s21 = sphi %s1479_s21, %s2571_s21   ;;  %s1418_s20 = sphi %s1477_s20, %s2575_s20   ;;  %s1414_s19 = sphi %s1475_s19, %s2574_s19   ;;  %s1410_s18 = sphi %s1473_s18, %s2573_s18  }
  0x10   : > { %s1052_s25 = sadd.s32 4294967294, %s1430_s23   ;;  %p63_p0 = scmp.ne.s32.totalorder %s1414_s19, %s1410_s18 }
  0x11   : > { %p2465_p1 = scmp.eq.s32.totalorder %s1504_s24, 0  ;;  %p175_p3 = scmp.eq.s32.totalorder %s1052_s25, 1 }
  0x12   : > { %p1053_p5 = scmp.ge.s32.totalorder %s1430_s23, 1  ;;  %p210_p7 = scmp.lt.s32.totalorder %s1430_s23, 3 }
  0x13   : > { %p1513_p4 = por %p2465_p1, %p63_p0  ;;  %p1518_p6 = por %p175_p3, %p63_p0 }
  0x14   : > { %p1523_p8 = pnand %p1053_p5, %p210_p7  ;;  %s1432_s29 = smov [#allocation7]  }
  0x15   : > { %s2500_s26 = scalar_select %p1513_p4, 1, 0 }
  0x16   : > { %s2501_s27 = scalar_select %p1518_p6, 1, 0 }
  0x17   : > { %s225_s30 = sshll.u32 %s1432_s29, 4  ;;  %p1106_p9 = pneg %p1523_p8  ;;  %s1527_s30 = int_to_ptr.vmem [resolvable:$true] %s225_s30 }
  0x18   : > { %s1433_s7 = smov [#allocation8]   ;;  %s2504_s2 = sld [smem:[#allocation47_spill]] }
  0x19   : > { %p1534_p11 = pnand %p1106_p9, %p2465_p1  ;;  %s241_s8 = sshll.u32 %s1433_s7, 4  ;;  %s1538_s8 = int_to_ptr.vmem [resolvable:$true] %s241_s8 }
  0x1b   : > { %p1190_p13 = pneg %p1534_p11 }
  0x1e   : > { %s1188_s11 = scalar_lea.hbm %s2504_s2, 1024 }
  0x1f   : > { %p1189_p12 = scmp.ne.s32.totalorder %s2504_s2, %s1188_s11  ;;  %p1195_p5 = scmp.lt.u32.totalorder %s1188_s11, %s2504_s2 }
  0x21   : > { %p1191_p0 = pnand %p1190_p13, %p1189_p12 }
  0x23   : > { %p1192_p3 = pneg %p1191_p0 }
  0x25   : > { %p1197_p7 = pnand %p1195_p5, %p1192_p3 }
  0x27   : > { %1200 = shalt.err (!%p1197_p7)
}
  0x28   : > { %s1201_s16 = scalar_lea.vmem %s1527_s30, 1024  ;;  %p1209_p2 = scmp.lt.s32.totalorder %s1527_s30, %s1527_s30 }
  0x29   : > { %p1202_p9 = scmp.ne.s32.totalorder %s1527_s30, %s1201_s16  ;;  %p1210_p12 = scmp.lt.s32.totalorder %s1201_s16, %s1201_s16 }
  0x2b   : > { %p1204_p10 = pnand %p1202_p9, %p1190_p13  ;;  %p1211_p0 = por %p1210_p12, %p1209_p2 }
  0x2d   : > { %p1205_p1 = pneg %p1204_p10 }
  0x2f   : > { %p1212_p6 = pnand %p1211_p0, %p1205_p1 }
  0x31   : > { %1215 = shalt.err (!%p1212_p6)
}
  0x32   : > { %s2466_s17 = smov 128   ;;  %s2468_s25 = smov 8  }
  0x33   : > { %1109 = dma.hbm_to_vmem [thread:$0]  (!%p1534_p11), %s2504_s2, 1024, %s1527_s30, [#allocation6], %s2466_s17, %s2466_s17, %s2468_s25  }
  0x34   : > { %s2505_s3 = sld [smem:[#allocation48_spill]] }
  0x3a   : > { %s1216_s11 = scalar_lea.hbm %s2505_s3, 1024 }
  0x3b   : > { %p1217_p1 = scmp.ne.s32.totalorder %s2505_s3, %s1216_s11  ;;  %p1223_p10 = scmp.lt.u32.totalorder %s1216_s11, %s2505_s3 }
  0x3d   : > { %p1219_p2 = pnand %p1217_p1, %p1190_p13 }
  0x3f   : > { %p1220_p6 = pneg %p1219_p2 }
  0x41   : > { %p1225_p3 = pnand %p1223_p10, %p1220_p6 }
  0x43   : > { %1228 = shalt.err (!%p1225_p3)
}
  0x44   : > { %s1229_s30 = scalar_lea.vmem %s1538_s8, 1024  ;;  %p1237_p12 = scmp.lt.s32.totalorder %s1538_s8, %s1538_s8 }
  0x45   : > { %p1230_p5 = scmp.ne.s32.totalorder %s1538_s8, %s1229_s30  ;;  %p1238_p0 = scmp.lt.s32.totalorder %s1229_s30, %s1229_s30 }
  0x47   : > { %p1232_p7 = pnand %p1230_p5, %p1190_p13  ;;  %p1239_p1 = por %p1238_p0, %p1237_p12 }
  0x49   : > { %p1233_p9 = pneg %p1232_p7 }
  0x4b   : > { %p1240_p2 = pnand %p1239_p1, %p1233_p9 }
  0x4d   : > { %1243 = shalt.err (!%p1240_p2)
}
  0x4e   : > { %1112 = dma.hbm_to_vmem [thread:$0]  (!%p1534_p11), %s2505_s3, 1024, %s1538_s8, [#allocation9], %s2466_s17, %s2466_s17, %s2468_s25  }
  0x4f   : > { %s38_s6 = sadd.s32 1, %s1426_s22  ;;  %s50_s7 = sadd.s32 1, %s1418_s20 }
  0x50   : > { %p39_p13 = scmp.ge.s32.totalorder %s38_s6, 2  ;;  %p57_p6 = scmp.ne.s32.totalorder %s1418_s20, %s1414_s19 }
  0x51   : > { %p58_p10 = scmp.eq.s32.totalorder %s1430_s23, 0  ;;  %p1129_p3 = scmp.lt.s32.totalorder %s1430_s23, 2 }
  0x52   : > { %s2577_s6 = smov (%p39_p13, %s38_s6), 0  ;;  %p2507_p7 = scmp.eq.s32.totalorder %s1504_s24, 1 }
  0x53   : > { %2506 = sst [smem:[#allocation20_spill]] %s2577_s6  ;;  %p59_p5 = por %p58_p10, %p57_p6 }
  0x54   : > { %p1608_p9 = por %p2507_p7, %p57_p6  ;;  %s45_s10 = ssub.s32 %s1426_s22, %s2577_s6 }
  0x55   : > { %s255_s11 = sand.u32 1, %s1418_s20   ;;  %p48_p12 = scmp.eq.s32.totalorder %s45_s10, 0 }
  0x56   : > { %s2508_s9 = scalar_select %p1608_p9, 1, 0 }
  0x57   : > { %s1615_s8 = sshll.u32 %s255_s11, 8  ;;  %s1083_s12 = sshll.u32 %s1426_s22, 12 }
  0x58   : > { %s1619_s13 = scalar_select %p48_p12, %s1418_s20, %s50_s7  }
  0x59   : > { %s2510_s0 = sld [smem:[#allocation46_spill]]  ;;  %s259_s16 = scalar_lea.vmem [#allocation2], %s1615_s8 }
  0x5a   : > { %2509 = sst [smem:[#allocation21_spill]] %s1619_s13  ;;  %s269_s29 = sshll.u32 %s259_s16, 4  ;;  %s1633_s29 = int_to_ptr.vmem [resolvable:$true] %s269_s29 }
  0x5b   : > { %p1629_p11 = pnand %p1129_p3, %p59_p5  ;;  %s1638_s14 = scalar_lea.hbm %s2460_s1, %s1083_s12 }
  0x5c   : > { %s1640_s15 = scalar_lea.sflag [#allocation3], %s255_s11 }
  0x5d   : > { %p1246_p1 = pneg %p1629_p11 }
  0x5f   : > { %s1624_s30 = scalar_lea.hbm %s2510_s0, %s1083_s12  ;;  %s1249_s3 = scalar_lea.hbm %s2510_s0, 8192 }
  0x60   : > { %s1244_s25 = scalar_lea.hbm %s1624_s30, 4096  ;;  %p1250_p6 = scmp.lt.u32.totalorder %s1624_s30, %s2510_s0 }
  0x61   : > { %p1245_p0 = scmp.ne.s32.totalorder %s1624_s30, %s1244_s25  ;;  %p1251_p10 = scmp.lt.u32.totalorder %s1249_s3, %s1244_s25 }
  0x62   : > { %p1253_p5 = scmp.lt.u32.totalorder %s1244_s25, %s1624_s30 }
  0x63   : > { %p1247_p2 = pnand %p1246_p1, %p1245_p0  ;;  %p1252_p3 = por %p1251_p10, %p1250_p6 }
  0x65   : > { %p1248_p13 = pneg %p1247_p2  ;;  %p1254_p7 = por %p1253_p5, %p1252_p3 }
  0x67   : > { %p1255_p12 = pnand %p1254_p7, %p1248_p13 }
  0x69   : > { %1258 = shalt.err (!%p1255_p12)
}
  0x6a   : > { %s1259_s17 = scalar_lea.vmem %s1633_s29, 4096  ;;  %s1436_s2 = smov [#allocation2]  }
  0x6b   : > { %p1260_p0 = scmp.ne.s32.totalorder %s1633_s29, %s1259_s17  ;;  %s1264_s11 = sshll.u32 %s1436_s2, 4  ;;  %s1265_s11 = int_to_ptr.vmem [resolvable:$false] %s1264_s11 }
  0x6c   : > { %s1266_s22 = scalar_lea.vmem %s1265_s11, 8192  ;;  %p1267_p4 = scmp.lt.s32.totalorder %s1633_s29, %s1265_s11 }
  0x6d   : > { %p1262_p2 = pnand %p1260_p0, %p1246_p1  ;;  %p1268_p6 = scmp.lt.s32.totalorder %s1266_s22, %s1259_s17 }
  0x6f   : > { %p1263_p9 = pneg %p1262_p2  ;;  %p1269_p10 = por %p1268_p6, %p1267_p4 }
  0x71   : > { %p1270_p3 = pnand %p1269_p10, %p1263_p9 }
  0x73   : > { %1273 = shalt.err (!%p1270_p3)
}
  0x74   : > { %s2512_s3 = smov 8   ;;  %s2513_s25 = smov 128  }
  0x75   : > { %1116 = dma.hbm_to_vmem [thread:$0]  (!%p1629_p11), %s1624_s30, 4096, %s1633_s29, %s1640_s15, %s2513_s25, %s2513_s25, %s2512_s3  }
  0x76   : > { %s283_s6 = scalar_lea.vmem [#allocation5], %s1615_s8  ;;  %s279_s7 = sand.u32 1, %s1430_s23  }
  0x77   : > { %s293_s12 = sshll.u32 %s283_s6, 4  ;;  %s1675_s16 = scalar_lea.sflag [#allocation6], %s279_s7  ;;  %s1673_s12 = int_to_ptr.vmem [resolvable:$true] %s293_s12 }
  0x78   : > { %s1274_s17 = scalar_lea.hbm %s1638_s14, 4096  ;;  %s1279_s22 = scalar_lea.hbm %s2460_s1, 8192 }
  0x79   : > { %p1275_p4 = scmp.ne.s32.totalorder %s1638_s14, %s1274_s17  ;;  %p1280_p5 = scmp.lt.u32.totalorder %s1638_s14, %s2460_s1 }
  0x7a   : > { %p1281_p7 = scmp.lt.u32.totalorder %s1279_s22, %s1274_s17  ;;  %p1283_p0 = scmp.lt.u32.totalorder %s1274_s17, %s1638_s14 }
  0x7b   : > { %p1277_p9 = pnand %p1275_p4, %p1246_p1 }
  0x7c   : > { %p1282_p12 = por %p1281_p7, %p1280_p5 }
  0x7d   : > { %p1278_p13 = pneg %p1277_p9 }
  0x7e   : > { %p1284_p2 = por %p1283_p0, %p1282_p12 }
  0x80   : > { %p1285_p6 = pnand %p1284_p2, %p1278_p13 }
  0x82   : > { %1288 = shalt.err (!%p1285_p6)
}
  0x83   : > { %s1289_s8 = scalar_lea.vmem %s1673_s12, 4096  ;;  %s1437_s30 = smov [#allocation5]  }
  0x84   : > { %p1290_p10 = scmp.ne.s32.totalorder %s1673_s12, %s1289_s8  ;;  %s1294_s29 = sshll.u32 %s1437_s30, 4  ;;  %s1295_s29 = int_to_ptr.vmem [resolvable:$false] %s1294_s29 }
  0x85   : > { %s1296_s0 = scalar_lea.vmem %s1295_s29, 8192  ;;  %p1297_p9 = scmp.lt.s32.totalorder %s1673_s12, %s1295_s29 }
  0x86   : > { %p1292_p3 = pnand %p1290_p10, %p1246_p1  ;;  %p1298_p5 = scmp.lt.s32.totalorder %s1296_s0, %s1289_s8 }
  0x88   : > { %p1293_p4 = pneg %p1292_p3  ;;  %p1299_p7 = por %p1298_p5, %p1297_p9 }
  0x8a   : > { %p1300_p12 = pnand %p1299_p7, %p1293_p4 }
  0x8c   : > { %1303 = shalt.err (!%p1300_p12)
}
  0x8d   : > { %1119 = dma.hbm_to_vmem [thread:$0]  (!%p1629_p11), %s1638_s14, 4096, %s1673_s12, %s1675_s16, %s2513_s25, %s2513_s25, %s2512_s3  }
  0x8e   : > { %305 = sbr.rel (%p1523_p8) target bundleno = 430 (0x1ae), region = 36 }
  0x95   : > { %s1707_s13 = sand.u32 1, %s1414_s19   ;;  %p2514_p1 = scmp.ne.s32.totalorder %s2500_s26, 0 }
  0x96   : > { %s1710_s15 = sshll.u32 %s1707_s13, 8  ;;  %s308_s10 = scalar_lea.sflag [#allocation3], %s1707_s13 }
  0x97   : > { %s1714_s6 = scalar_lea.vmem [#allocation2], %s1710_s15 }
  0x98   : > { %1385 = dma.done.wait (%p2514_p1), %s308_s10, 4096  }
  0x99   : > { %1387 = vsyncadd (%p2514_p1), %s308_s10, 4294963200  ;;  %s316_s28 = sand.u32 1, %s1504_s24   ;;  %s1722_s3 = scalar_lea.vmem [#allocation5], %s1710_s15 }
  0x9a   : > { %s317_s14 = scalar_lea.sflag [#allocation6], %s316_s28 }
  0x9b   : > { %1389 = dma.done.wait (%p2514_p1), %s317_s14, 4096  }
  0x9c   : > { %1391 = vsyncadd (%p2514_p1), %s317_s14, 4294963200  ;;  %p2515_p8 = scmp.eq.s32.totalorder %s1504_s24, 0 }
  0x9e   : > { %1393 = dma.done.wait (%p2515_p8), [#allocation6], 1024   ;;  %p2516_p11 = pmov %p2515_p8 }
  0x9f   : > { %p2517_p13 = pmov %p2515_p8 }
  0xa0   : > { %1395 = vsyncadd (%p2516_p11), [#allocation6], 4294966272 }
  0xa1   : > { %1397 = dma.done.wait (%p2517_p13), [#allocation9], 1024   ;;  %p2518_p0 = pmov %p2515_p8 }
  0xa2   : > { %v1737_v0 = vld [vmem:[%s1714_s6 + $0x10] sm:$0xff]  ;;  %v1740_v1 = vld [vmem:[%s1714_s6] sm:$0xff]  ;;  %s1438_s26 = smov 64   ;;  %v1747_v2 = vld [vmem:[%s1714_s6 + $0x18] sm:$0xff]  ;;  %s2097_s24 = scalar_lea.vmem [#allocation10], %s1710_s15 }
  0xa3   : > { %1399 = vsyncadd (%p2518_p0), [#allocation9], 4294966272  ;;  %459 = vrot.lane.b32.xlu1 %v1737_v0, %s1438_s26  ;;  %455 = vrot.lane.b32.xlu0 %v1740_v1, %s1438_s26  ;;  %v1750_v3 = vld [vmem:[%s1714_s6 + $0x8] sm:$0xff]  ;;  %v1760_v5 = vld [vmem:[%s1714_s6 + $0x20] sm:$0xff]  ;;  %s1087_s25 = sshll.u32 %s1422_s21, 12  ;;  %s861_s12 = sshll.u32 %s2097_s24, 4  ;;  %s2246_s12 = int_to_ptr.vmem [resolvable:$true] %s861_s12 }
  0xa4   : > { %v1757_v4 = vld [vmem:[%s1714_s6 + $0x28] sm:$0xff]  ;;  %v1767_v6 = vld [vmem:[%s1714_s6 + $0x38] sm:$0xff]  ;;  %v1770_v7 = vld [vmem:[%s1714_s6 + $0x30] sm:$0xff]  ;;  %s2244_s17 = scalar_lea.hbm %s2463_s4, %s1087_s25  ;;  %s840_s2 = scalar_lea.sflag [#allocation4], %s1707_s13 }
  0xa5   : > { %v1772_v8 = vld [vmem:[#allocation7] sm:$0xff]  ;;  %v1774_v9 = vld [vmem:[#allocation7 + $0x18] sm:$0xff]  ;;  %v1776_v10 = vld [vmem:[#allocation7 + $0x10] sm:$0xff]  ;;  %s1304_s11 = scalar_lea.vmem %s2246_s12, 4096  ;;  %p2543_p6 = scmp.ne.s32.totalorder %s2508_s9, 0 }
  0xa6   : > { %v1778_v11 = vld [vmem:[#allocation7 + $0x28] sm:$0xff]  ;;  %v1780_v12 = vld [vmem:[#allocation7 + $0x20] sm:$0xff]  ;;  %v1791_v15 = vld [vmem:[#allocation7 + $0x38] sm:$0xff]  ;;  %p1305_p2 = scmp.ne.s32.totalorder %s2246_s12, %s1304_s11  ;;  %s1439_s22 = smov [#allocation10]  }
  0xa7   : > { %461 = vrot.lane.b32.xlu1 %v1747_v2, %s1438_s26  ;;  %457 = vrot.lane.b32.xlu0 %v1750_v3, %s1438_s26  ;;  %v1787_v13 = vld [vmem:[%s1714_s6 + $0x48] sm:$0xff]  ;;  %v1793_v16 = vld [vmem:[#allocation7 + $0x30] sm:$0xff]  ;;  %v1796_v17 = vld [vmem:[%s1714_s6 + $0x40] sm:$0xff]  ;;  %s1308_s8 = sshll.u32 %s1439_s22, 4  ;;  %s1309_s8 = int_to_ptr.vmem [resolvable:$false] %s1308_s8 }
  0xa8   : > { %v1789_v14 = vld [vmem:[#allocation7 + $0x8] sm:$0xff]  ;;  %v1799_v18 = vld [vmem:[%s1722_s3] sm:$0xff]  ;;  %v1802_v19 = vld [vmem:[%s1722_s3 + $0x18] sm:$0xff]  ;;  %p1306_p10 = pnand %p1305_p2, %p2543_p6  ;;  %s1310_s30 = scalar_lea.vmem %s1309_s8, 8192 }
  0xa9   : > { %v1806_v20 = vmul.f32 %v1772_v8, %v1799_v18  ;;  %v1810_v21 = vmul.f32 %v1774_v9, %v1802_v19  ;;  %v1813_v22 = vld [vmem:[%s1722_s3 + $0x10] sm:$0xff]  ;;  %v1816_v23 = vld [vmem:[%s1722_s3 + $0x28] sm:$0xff]  ;;  %v1819_v24 = vld [vmem:[%s1722_s3 + $0x20] sm:$0xff]  ;;  %p1311_p4 = scmp.lt.s32.totalorder %s2246_s12, %s1309_s8  ;;  %p1312_p9 = scmp.lt.s32.totalorder %s1310_s30, %s1304_s11 }
  0xaa   : > { %v1823_v25 = vmul.f32 %v1776_v10, %v1813_v22  ;;  %v1827_v26 = vmul.f32 %v1778_v11, %v1816_v23  ;;  %v1831_v27 = vmul.f32 %v1780_v12, %v1819_v24  ;;  %v414_v28 = vld [vmem:[%s1722_s3 + $0x38] sm:$0xff]  ;;  %v413_v29 = vld [vmem:[%s1722_s3 + $0x30] sm:$0xff]  ;;  %v416_v30 = vld [vmem:[%s1722_s3 + $0x48] sm:$0xff]  ;;  %p1307_p3 = pneg %p1306_p10 }
  0xab   : > { %465 = vrot.lane.b32.xlu1 %v1757_v4, %s1438_s26  ;;  %463 = vrot.lane.b32.xlu0 %v1760_v5, %s1438_s26  ;;  %v1841_v31 = vmul.f32 %v1791_v15, %v414_v28  ;;  %v1844_v32 = vmul.f32 %v1793_v16, %v413_v29  ;;  %v1847_v33 = vmul.f32 %v1789_v14, %v416_v30  ;;  %v415_v34 = vld [vmem:[%s1722_s3 + $0x40] sm:$0xff]  ;;  %v1851_v35 = vld [vmem:[%s1714_s6 + $0x58] sm:$0xff]  ;;  %p1313_p5 = por %p1312_p9, %p1311_p4 }
  0xac   : > { %v1854_v36 = vld [vmem:[%s1714_s6 + $0x50] sm:$0xff]  ;;  %v1857_v37 = vmul.f32 %v1772_v8, %v415_v34  ;;  %v1864_v38 = vld [vmem:[%s1714_s6 + $0x68] sm:$0xff]  ;;  %v1867_v39 = vld [vmem:[%s1714_s6 + $0x60] sm:$0xff] }
  0xad   : > { %2519 = vst [vmem:[#allocation22_spill] sm:$0xff] %v1847_v33  ;;  %v1874_v40 = vld [vmem:[%s1714_s6 + $0x78] sm:$0xff]  ;;  %v1877_v41 = vld [vmem:[%s1714_s6 + $0x70] sm:$0xff]  ;;  %v1884_v42 = vld [vmem:[%s1714_s6 + $0x88] sm:$0xff]  ;;  %p1314_p7 = pnand %p1313_p5, %p1307_p3 }
  0xae   : > { %2520 = vst [vmem:[#allocation23_spill] sm:$0xff] %v1857_v37  ;;  %v1887_v43 = vld [vmem:[%s1714_s6 + $0x80] sm:$0xff]  ;;  %v1894_v44 = vld [vmem:[%s1714_s6 + $0x98] sm:$0xff]  ;;  %v1897_v45 = vld [vmem:[%s1714_s6 + $0x90] sm:$0xff] }
  0xaf   : > { %469 = vrot.lane.b32.xlu1 %v1767_v6, %s1438_s26  ;;  %467 = vrot.lane.b32.xlu0 %v1770_v7, %s1438_s26  ;;  %v1904_v46 = vld [vmem:[%s1714_s6 + $0xa8] sm:$0xff]  ;;  %v1907_v47 = vld [vmem:[%s1714_s6 + $0xa0] sm:$0xff] }
  0xb0   : > { %v1914_v48 = vld [vmem:[%s1714_s6 + $0xb8] sm:$0xff]  ;;  %v1917_v49 = vld [vmem:[%s1714_s6 + $0xb0] sm:$0xff]  ;;  %v1924_v50 = vld [vmem:[%s1714_s6 + $0xc8] sm:$0xff] }
  0xb1   : > { %v1927_v51 = vld [vmem:[%s1714_s6 + $0xc0] sm:$0xff]  ;;  %v1934_v52 = vld [vmem:[%s1714_s6 + $0xd8] sm:$0xff]  ;;  %v1937_v53 = vld [vmem:[%s1714_s6 + $0xd0] sm:$0xff] }
  0xb2   : > { %v1944_v54 = vld [vmem:[%s1714_s6 + $0xe8] sm:$0xff]  ;;  %v1947_v55 = vld [vmem:[%s1714_s6 + $0xe0] sm:$0xff]  ;;  %v1954_v56 = vld [vmem:[%s1714_s6 + $0xf8] sm:$0xff] }
  0xb3   : > { %473 = vrot.lane.b32.xlu1 %v1787_v13, %s1438_s26  ;;  %471 = vrot.lane.b32.xlu0 %v1796_v17, %s1438_s26  ;;  %v1957_v57 = vld [vmem:[%s1714_s6 + $0xf0] sm:$0xff]  ;;  %v1964_v58 = vld [vmem:[%s1722_s3 + $0x8] sm:$0xff] }
  0xb4   : > { %v1983_v59 = vld [vmem:[%s1722_s3 + $0x58] sm:$0xff]  ;;  %v1986_v60 = vld [vmem:[%s1722_s3 + $0x50] sm:$0xff]  ;;  %v1993_v61 = vld [vmem:[%s1722_s3 + $0x68] sm:$0xff] }
  0xb5   : > { %2521 = vst [vmem:[#allocation24_spill] sm:$0xff] %v1983_v59  ;;  %2522 = vst [vmem:[#allocation25_spill] sm:$0xff] %v1986_v60  ;;  %v1996_v62 = vld [vmem:[%s1722_s3 + $0x60] sm:$0xff]  ;;  %v2003_v63 = vld [vmem:[%s1722_s3 + $0x78] sm:$0xff] }
  0xb6   : > { %2523 = vst [vmem:[#allocation26_spill] sm:$0xff] %v1993_v61  ;;  %2524 = vst [vmem:[#allocation27_spill] sm:$0xff] %v1996_v62  ;;  %v2091_v33 = vld [vmem:[%s1722_s3 + $0xe8] sm:$0xff] }
  0xb7   : > { %477 = vrot.lane.b32.xlu1 %v1851_v35, %s1438_s26  ;;  %475 = vrot.lane.b32.xlu0 %v1854_v36, %s1438_s26  ;;  %2525 = vst [vmem:[#allocation28_spill] sm:$0xff] %v2003_v63  ;;  %2539 = vst [vmem:[#allocation42_spill] sm:$0xff] %v2091_v33 }
  0xbb   : > { %481 = vrot.lane.b32.xlu1 %v1864_v38, %s1438_s26  ;;  %479 = vrot.lane.b32.xlu0 %v1867_v39, %s1438_s26 }
  0xbf   : > { %485 = vrot.lane.b32.xlu1 %v1874_v40, %s1438_s26  ;;  %483 = vrot.lane.b32.xlu0 %v1877_v41, %s1438_s26 }
  0xc3   : > { %489 = vrot.lane.b32.xlu1 %v1884_v42, %s1438_s26  ;;  %487 = vrot.lane.b32.xlu0 %v1887_v43, %s1438_s26 }
  0xc7   : > { %493 = vrot.lane.b32.xlu1 %v1894_v44, %s1438_s26  ;;  %491 = vrot.lane.b32.xlu0 %v1897_v45, %s1438_s26 }
  0xcb   : > { %497 = vrot.lane.b32.xlu1 %v1904_v46, %s1438_s26  ;;  %495 = vrot.lane.b32.xlu0 %v1907_v47, %s1438_s26 }
  0xcf   : > { %501 = vrot.lane.b32.xlu1 %v1914_v48, %s1438_s26  ;;  %499 = vrot.lane.b32.xlu0 %v1917_v49, %s1438_s26 }
  0xd3   : > { %505 = vrot.lane.b32.xlu1 %v1924_v50, %s1438_s26  ;;  %503 = vrot.lane.b32.xlu0 %v1927_v51, %s1438_s26 }
  0xd7   : > { %509 = vrot.lane.b32.xlu1 %v1934_v52, %s1438_s26  ;;  %507 = vrot.lane.b32.xlu0 %v1937_v53, %s1438_s26 }
  0xdb   : > { %513 = vrot.lane.b32.xlu1 %v1944_v54, %s1438_s26  ;;  %511 = vrot.lane.b32.xlu0 %v1947_v55, %s1438_s26 }
  0xdf   : > { %517 = vrot.lane.b32.xlu1 %v1954_v56, %s1438_s26  ;;  %515 = vrot.lane.b32.xlu0 %v1957_v57, %s1438_s26 }
  0xe3   : > { %521 = vrot.lane.b32.xlu1 %v1964_v58, %s1438_s26  ;;  %519 = vrot.lane.b32.xlu0 %v1799_v18, %s1438_s26  ;;  %v2006_v18 = vld [vmem:[%s1722_s3 + $0x70] sm:$0xff] }
  0xe4   : > { %2526 = vst [vmem:[#allocation29_spill] sm:$0xff] %v2006_v18 }
  0xe7   : > { %525 = vrot.lane.b32.xlu1 %v1802_v19, %s1438_s26  ;;  %523 = vrot.lane.b32.xlu0 %v1813_v22, %s1438_s26  ;;  %v2013_v19 = vld [vmem:[%s1722_s3 + $0x88] sm:$0xff]  ;;  %v2016_v22 = vld [vmem:[%s1722_s3 + $0x80] sm:$0xff] }
  0xe8   : > { %2527 = vst [vmem:[#allocation30_spill] sm:$0xff] %v2013_v19  ;;  %2528 = vst [vmem:[#allocation31_spill] sm:$0xff] %v2016_v22 }
  0xeb   : > { %529 = vrot.lane.b32.xlu1 %v1816_v23, %s1438_s26  ;;  %527 = vrot.lane.b32.xlu0 %v1819_v24, %s1438_s26  ;;  %v2023_v23 = vld [vmem:[%s1722_s3 + $0x98] sm:$0xff]  ;;  %v2026_v24 = vld [vmem:[%s1722_s3 + $0x90] sm:$0xff] }
  0xec   : > { %2529 = vst [vmem:[#allocation32_spill] sm:$0xff] %v2023_v23  ;;  %2530 = vst [vmem:[#allocation33_spill] sm:$0xff] %v2026_v24 }
  0xef   : > { %533 = vrot.lane.b32.xlu1 %v414_v28, %s1438_s26  ;;  %531 = vrot.lane.b32.xlu0 %v413_v29, %s1438_s26  ;;  %v2033_v28 = vld [vmem:[%s1722_s3 + $0xa8] sm:$0xff]  ;;  %v2036_v29 = vld [vmem:[%s1722_s3 + $0xa0] sm:$0xff] }
  0xf0   : > { %2531 = vst [vmem:[#allocation34_spill] sm:$0xff] %v2033_v28  ;;  %2532 = vst [vmem:[#allocation35_spill] sm:$0xff] %v2036_v29 }
  0xf3   : > { %537 = vrot.lane.b32.xlu1 %v416_v30, %s1438_s26  ;;  %535 = vrot.lane.b32.xlu0 %v415_v34, %s1438_s26  ;;  %v2043_v30 = vld [vmem:[%s1722_s3 + $0xb8] sm:$0xff]  ;;  %v2046_v34 = vld [vmem:[%s1722_s3 + $0xb0] sm:$0xff] }
  0xf4   : > { %2533 = vst [vmem:[#allocation36_spill] sm:$0xff] %v2043_v30  ;;  %2534 = vst [vmem:[#allocation37_spill] sm:$0xff] %v2046_v34 }
  0xf7   : > { %541 = vrot.lane.b32.xlu1 %v1983_v59, %s1438_s26  ;;  %539 = vrot.lane.b32.xlu0 %v1986_v60, %s1438_s26 }
  0xfb   : > { %545 = vrot.lane.b32.xlu1 %v1993_v61, %s1438_s26  ;;  %543 = vrot.lane.b32.xlu0 %v1996_v62, %s1438_s26  ;;  %v586_v62 = vmul.f32 %v1774_v9, %v1747_v2  ;;  %v584_v61 = vmul.f32 %v1789_v14, %v1750_v3 }
  0xff   : > { %549 = vrot.lane.b32.xlu1 %v2003_v63, %s1438_s26  ;;  %547 = vrot.lane.b32.xlu0 %v2006_v18, %s1438_s26 }
 0x103   : > { %553 = vrot.lane.b32.xlu1 %v2013_v19, %s1438_s26  ;;  %551 = vrot.lane.b32.xlu0 %v2016_v22, %s1438_s26  ;;  %v2071_v22 = vld [vmem:[%s1722_s3 + $0xd8] sm:$0xff]  ;;  %v2074_v19 = vld [vmem:[%s1722_s3 + $0xd0] sm:$0xff] }
 0x104   : > { %2537 = vst [vmem:[#allocation40_spill] sm:$0xff] %v2071_v22  ;;  %2538 = vst [vmem:[#allocation41_spill] sm:$0xff] %v2074_v19 }
 0x107   : > { %557 = vrot.lane.b32.xlu1 %v2023_v23, %s1438_s26  ;;  %555 = vrot.lane.b32.xlu0 %v2026_v24, %s1438_s26  ;;  %v2053_v24 = vld [vmem:[%s1722_s3 + $0xc8] sm:$0xff]  ;;  %v2056_v23 = vld [vmem:[%s1722_s3 + $0xc0] sm:$0xff] }
 0x108   : > { %2535 = vst [vmem:[#allocation38_spill] sm:$0xff] %v2053_v24  ;;  %2536 = vst [vmem:[#allocation39_spill] sm:$0xff] %v2056_v23 }
 0x10b   : > { %561 = vrot.lane.b32.xlu1 %v2033_v28, %s1438_s26  ;;  %559 = vrot.lane.b32.xlu0 %v2036_v29, %s1438_s26  ;;  %v2062_v29 = vld [vmem:[#allocation8 + $0x10] sm:$0xff]  ;;  %v2064_v28 = vld [vmem:[#allocation8] sm:$0xff] }
 0x10f   : > { %565 = vrot.lane.b32.xlu1 %v2043_v30, %s1438_s26  ;;  %563 = vrot.lane.b32.xlu0 %v2046_v34, %s1438_s26  ;;  %v585_v30 = vmul.f32 %v1776_v10, %v1737_v0  ;;  %v583_v34 = vmul.f32 %v1772_v8, %v1740_v1  ;;  %v2082_v0 = vld [vmem:[#allocation8 + $0x18] sm:$0xff]  ;;  %v2084_v1 = vld [vmem:[#allocation8 + $0x8] sm:$0xff] }
 0x113   : > { %569 = vrot.lane.b32.xlu1 %v2053_v24, %s1438_s26  ;;  %567 = vrot.lane.b32.xlu0 %v2056_v23, %s1438_s26 }
 0x115   : > { %v460_v24 = vpop.permute.xlu1 %459  ;;  %v456_v18 = vpop.permute.xlu0 %455 }
 0x116   : > { %v617_v23 = vmul.f32 %v460_v24, %v2062_v29  ;;  %v615_v63 = vmul.f32 %v456_v18, %v2064_v28  ;;  %v2094_v18 = vld [vmem:[%s1722_s3 + $0xe0] sm:$0xff] }
 0x117   : > { %573 = vrot.lane.b32.xlu1 %v2071_v22, %s1438_s26  ;;  %571 = vrot.lane.b32.xlu0 %v2074_v19, %s1438_s26  ;;  %2540 = vst [vmem:[#allocation43_spill] sm:$0xff] %v2094_v18 }
 0x118   : > { %v649_v37 = vadd.f32 %v617_v23, %v585_v30  ;;  %v647_v24 = vadd.f32 %v615_v63, %v583_v34  ;;  %v2107_v63 = vld [vmem:[#allocation8 + $0x28] sm:$0xff]  ;;  %v2109_v23 = vld [vmem:[#allocation8 + $0x20] sm:$0xff]  ;;  %v587_v30 = vmul.f32 %v1780_v12, %v1760_v5  ;;  %v2131_v5 = vld [vmem:[#allocation8 + $0x30] sm:$0xff] }
 0x119   : > { %v462_v22 = vpop.permute.xlu1 %461  ;;  %v458_v19 = vpop.permute.xlu0 %457 }
 0x11a   : > { %681 = vst [vmem:[%s2097_s24 + $0x10] sm:$0xff] %v649_v37  ;;  %679 = vst [vmem:[%s2097_s24] sm:$0xff] %v647_v24  ;;  %v618_v2 = vmul.f32 %v462_v22, %v2082_v0  ;;  %v616_v3 = vmul.f32 %v458_v19, %v2084_v1  ;;  %v588_v37 = vmul.f32 %v1778_v11, %v1757_v4  ;;  %v2116_v24 = vld [vmem:[%s1722_s3 + $0xf8] sm:$0xff]  ;;  %v2119_v19 = vld [vmem:[%s1722_s3 + $0xf0] sm:$0xff] }
 0x11b   : > { %577 = vrot.lane.b32.xlu1 %v2091_v33, %s1438_s26  ;;  %575 = vrot.lane.b32.xlu0 %v2094_v18, %s1438_s26  ;;  %2541 = vst [vmem:[#allocation44_spill] sm:$0xff] %v2116_v24  ;;  %2542 = vst [vmem:[#allocation45_spill] sm:$0xff] %v2119_v19  ;;  %v2129_v4 = vld [vmem:[#allocation8 + $0x38] sm:$0xff] }
 0x11c   : > { %v650_v34 = vadd.f32 %v618_v2, %v586_v62  ;;  %v648_v22 = vadd.f32 %v616_v3, %v584_v61  ;;  %v590_v61 = vmul.f32 %v1791_v15, %v1767_v6  ;;  %v589_v62 = vmul.f32 %v1793_v16, %v1770_v7 }
 0x11d   : > { %v466_v33 = vpop.permute.xlu1 %465  ;;  %v464_v60 = vpop.permute.xlu0 %463  ;;  %v591_v6 = vmul.f32 %v1772_v8, %v1796_v17 }
 0x11e   : > { %682 = vst [vmem:[%s2097_s24 + $0x18] sm:$0xff] %v650_v34  ;;  %680 = vst [vmem:[%s2097_s24 + $0x8] sm:$0xff] %v648_v22  ;;  %v620_v18 = vmul.f32 %v466_v33, %v2107_v63  ;;  %v619_v59 = vmul.f32 %v464_v60, %v2109_v23 }
 0x11f   : > { %581 = vrot.lane.b32.xlu1 %v2116_v24, %s1438_s26  ;;  %579 = vrot.lane.b32.xlu0 %v2119_v19, %s1438_s26  ;;  %v592_v19 = vmul.f32 %v1789_v14, %v1787_v13  ;;  %v593_v13 = vmul.f32 %v1776_v10, %v1854_v36 }
 0x120   : > { %v652_v33 = vadd.f32 %v620_v18, %v588_v37  ;;  %v651_v60 = vadd.f32 %v619_v59, %v587_v30 }
 0x121   : > { %v470_v2 = vpop.permute.xlu1 %469  ;;  %v468_v3 = vpop.permute.xlu0 %467 }
 0x122   : > { %684 = vst [vmem:[%s2097_s24 + $0x28] sm:$0xff] %v652_v33  ;;  %683 = vst [vmem:[%s2097_s24 + $0x20] sm:$0xff] %v651_v60  ;;  %v622_v34 = vmul.f32 %v470_v2, %v2129_v4  ;;  %v621_v22 = vmul.f32 %v468_v3, %v2131_v5  ;;  %v594_v33 = vmul.f32 %v1774_v9, %v1851_v35 }
 0x123   : > { %v596_v3 = vmul.f32 %v1778_v11, %v1864_v38  ;;  %v595_v35 = vmul.f32 %v1780_v12, %v1867_v39  ;;  %v597_v38 = vmul.f32 %v1793_v16, %v1877_v41 }
 0x124   : > { %v654_v7 = vadd.f32 %v622_v34, %v590_v61  ;;  %v653_v24 = vadd.f32 %v621_v22, %v589_v62 }
 0x125   : > { %v474_v18 = vpop.permute.xlu1 %473  ;;  %v472_v59 = vpop.permute.xlu0 %471 }
 0x126   : > { %686 = vst [vmem:[%s2097_s24 + $0x38] sm:$0xff] %v654_v7  ;;  %685 = vst [vmem:[%s2097_s24 + $0x30] sm:$0xff] %v653_v24  ;;  %v624_v37 = vmul.f32 %v474_v18, %v2084_v1  ;;  %v623_v30 = vmul.f32 %v472_v59, %v2064_v28  ;;  %v598_v18 = vmul.f32 %v1791_v15, %v1874_v40 }
 0x127   : > { %v599_v40 = vmul.f32 %v1772_v8, %v1887_v43 }
 0x128   : > { %v656_v17 = vadd.f32 %v624_v37, %v592_v19  ;;  %v655_v60 = vadd.f32 %v623_v30, %v591_v6 }
 0x129   : > { %v478_v61 = vpop.permute.xlu1 %477  ;;  %v476_v62 = vpop.permute.xlu0 %475 }
 0x12a   : > { %688 = vst [vmem:[%s2097_s24 + $0x48] sm:$0xff] %v656_v17  ;;  %687 = vst [vmem:[%s2097_s24 + $0x40] sm:$0xff] %v655_v60  ;;  %v626_v24 = vmul.f32 %v478_v61, %v2082_v0  ;;  %v625_v2 = vmul.f32 %v476_v62, %v2062_v29  ;;  %v600_v17 = vmul.f32 %v1789_v14, %v1884_v42 }
 0x12b   : > { %v601_v42 = vmul.f32 %v1776_v10, %v1897_v45 }
 0x12c   : > { %v658_v36 = vadd.f32 %v626_v24, %v594_v33  ;;  %v657_v34 = vadd.f32 %v625_v2, %v593_v13 }
 0x12d   : > { %v482_v19 = vpop.permute.xlu1 %481  ;;  %v480_v22 = vpop.permute.xlu0 %479 }
 0x12e   : > { %690 = vst [vmem:[%s2097_s24 + $0x58] sm:$0xff] %v658_v36  ;;  %689 = vst [vmem:[%s2097_s24 + $0x50] sm:$0xff] %v657_v34  ;;  %v628_v6 = vmul.f32 %v482_v19, %v2107_v63  ;;  %v627_v7 = vmul.f32 %v480_v22, %v2109_v23 }
 0x130   : > { %v660_v39 = vadd.f32 %v628_v6, %v596_v3  ;;  %v659_v59 = vadd.f32 %v627_v7, %v595_v35  ;;  %v602_v3 = vmul.f32 %v1774_v9, %v1894_v44  ;;  %v604_v6 = vmul.f32 %v1778_v11, %v1904_v46 }
 0x131   : > { %v486_v37 = vpop.permute.xlu1 %485  ;;  %v484_v30 = vpop.permute.xlu0 %483  ;;  %v603_v44 = vmul.f32 %v1780_v12, %v1907_v47  ;;  %v605_v46 = vmul.f32 %v1793_v16, %v1917_v49 }
 0x132   : > { %692 = vst [vmem:[%s2097_s24 + $0x68] sm:$0xff] %v660_v39  ;;  %691 = vst [vmem:[%s2097_s24 + $0x60] sm:$0xff] %v659_v59  ;;  %v630_v33 = vmul.f32 %v486_v37, %v2129_v4  ;;  %v629_v13 = vmul.f32 %v484_v30, %v2131_v5  ;;  %v606_v37 = vmul.f32 %v1791_v15, %v1914_v48 }
 0x133   : > { %v607_v48 = vmul.f32 %v1772_v8, %v1927_v51 }
 0x134   : > { %v662_v41 = vadd.f32 %v630_v33, %v598_v18  ;;  %v661_v60 = vadd.f32 %v629_v13, %v597_v38 }
 0x135   : > { %v490_v61 = vpop.permute.xlu1 %489  ;;  %v488_v62 = vpop.permute.xlu0 %487 }
 0x136   : > { %694 = vst [vmem:[%s2097_s24 + $0x78] sm:$0xff] %v662_v41  ;;  %693 = vst [vmem:[%s2097_s24 + $0x70] sm:$0xff] %v661_v60  ;;  %v632_v24 = vmul.f32 %v490_v61, %v2084_v1  ;;  %v631_v2 = vmul.f32 %v488_v62, %v2064_v28  ;;  %v608_v41 = vmul.f32 %v1789_v14, %v1924_v50 }
 0x137   : > { %v609_v50 = vmul.f32 %v1776_v10, %v1937_v53 }
 0x138   : > { %v664_v43 = vadd.f32 %v632_v24, %v600_v17  ;;  %v663_v35 = vadd.f32 %v631_v2, %v599_v40 }
 0x139   : > { %v494_v36 = vpop.permute.xlu1 %493  ;;  %v492_v34 = vpop.permute.xlu0 %491 }
 0x13a   : > { %696 = vst [vmem:[%s2097_s24 + $0x88] sm:$0xff] %v664_v43  ;;  %695 = vst [vmem:[%s2097_s24 + $0x80] sm:$0xff] %v663_v35  ;;  %v634_v19 = vmul.f32 %v494_v36, %v2082_v0  ;;  %v633_v22 = vmul.f32 %v492_v34, %v2062_v29 }
 0x13c   : > { %v666_v45 = vadd.f32 %v634_v19, %v602_v3  ;;  %v665_v7 = vadd.f32 %v633_v22, %v601_v42  ;;  %v610_v3 = vmul.f32 %v1774_v9, %v1934_v52  ;;  %v612_v52 = vmul.f32 %v1778_v11, %v1944_v54 }
 0x13d   : > { %v498_v18 = vpop.permute.xlu1 %497  ;;  %v496_v38 = vpop.permute.xlu0 %495  ;;  %v611_v19 = vmul.f32 %v1780_v12, %v1947_v55  ;;  %v613_v54 = vmul.f32 %v1793_v16, %v1957_v57 }
 0x13e   : > { %698 = vst [vmem:[%s2097_s24 + $0x98] sm:$0xff] %v666_v45  ;;  %697 = vst [vmem:[%s2097_s24 + $0x90] sm:$0xff] %v665_v7  ;;  %v636_v39 = vmul.f32 %v498_v18, %v2107_v63  ;;  %v635_v59 = vmul.f32 %v496_v38, %v2109_v23  ;;  %v614_v18 = vmul.f32 %v1791_v15, %v1954_v56 }
 0x13f   : > { %v712_v56 = vmul.f32 %v1789_v14, %v1964_v58 }
 0x140   : > { %v668_v47 = vadd.f32 %v636_v39, %v604_v6  ;;  %v667_v30 = vadd.f32 %v635_v59, %v603_v44 }
 0x141   : > { %v502_v33 = vpop.permute.xlu1 %501  ;;  %v500_v13 = vpop.permute.xlu0 %499 }
 0x142   : > { %700 = vst [vmem:[%s2097_s24 + $0xa8] sm:$0xff] %v668_v47  ;;  %699 = vst [vmem:[%s2097_s24 + $0xa0] sm:$0xff] %v667_v30  ;;  %v638_v17 = vmul.f32 %v502_v33, %v2129_v4  ;;  %v637_v40 = vmul.f32 %v500_v13, %v2131_v5 }
 0x144   : > { %v670_v49 = vadd.f32 %v638_v17, %v606_v37  ;;  %v669_v60 = vadd.f32 %v637_v40, %v605_v46 }
 0x145   : > { %v506_v61 = vpop.permute.xlu1 %505  ;;  %v504_v62 = vpop.permute.xlu0 %503 }
 0x146   : > { %702 = vst [vmem:[%s2097_s24 + $0xb8] sm:$0xff] %v670_v49  ;;  %701 = vst [vmem:[%s2097_s24 + $0xb0] sm:$0xff] %v669_v60  ;;  %v640_v24 = vmul.f32 %v506_v61, %v2084_v1  ;;  %v639_v2 = vmul.f32 %v504_v62, %v2064_v28 }
 0x148   : > { %v672_v51 = vadd.f32 %v640_v24, %v608_v41  ;;  %v671_v42 = vadd.f32 %v639_v2, %v607_v48 }
 0x149   : > { %v510_v43 = vpop.permute.xlu1 %509  ;;  %v508_v35 = vpop.permute.xlu0 %507 }
 0x14a   : > { %704 = vst [vmem:[%s2097_s24 + $0xc8] sm:$0xff] %v672_v51  ;;  %703 = vst [vmem:[%s2097_s24 + $0xc0] sm:$0xff] %v671_v42  ;;  %v642_v36 = vmul.f32 %v510_v43, %v2082_v0  ;;  %v641_v34 = vmul.f32 %v508_v35, %v2062_v29 }
 0x14c   : > { %v674_v53 = vadd.f32 %v642_v36, %v610_v3  ;;  %v673_v22 = vadd.f32 %v641_v34, %v609_v50 }
 0x14d   : > { %v514_v6 = vpop.permute.xlu1 %513  ;;  %v512_v44 = vpop.permute.xlu0 %511 }
 0x14e   : > { %706 = vst [vmem:[%s2097_s24 + $0xd8] sm:$0xff] %v674_v53  ;;  %705 = vst [vmem:[%s2097_s24 + $0xd0] sm:$0xff] %v673_v22  ;;  %v644_v45 = vmul.f32 %v514_v6, %v2107_v63  ;;  %v643_v7 = vmul.f32 %v512_v44, %v2109_v23 }
 0x150   : > { %v676_v55 = vadd.f32 %v644_v45, %v612_v52  ;;  %v675_v38 = vadd.f32 %v643_v7, %v611_v19 }
 0x151   : > { %v518_v39 = vpop.permute.xlu1 %517  ;;  %v516_v59 = vpop.permute.xlu0 %515 }
 0x152   : > { %708 = vst [vmem:[%s2097_s24 + $0xe8] sm:$0xff] %v676_v55  ;;  %707 = vst [vmem:[%s2097_s24 + $0xe0] sm:$0xff] %v675_v38  ;;  %v646_v37 = vmul.f32 %v518_v39, %v2129_v4  ;;  %v645_v46 = vmul.f32 %v516_v59, %v2131_v5 }
 0x154   : > { %v678_v57 = vadd.f32 %v646_v37, %v614_v18  ;;  %v677_v47 = vadd.f32 %v645_v46, %v613_v54 }
 0x155   : > { %v522_v30 = vpop.permute.xlu1 %521  ;;  %v520_v33 = vpop.permute.xlu0 %519 }
 0x156   : > { %710 = vst [vmem:[%s2097_s24 + $0xf8] sm:$0xff] %v678_v57  ;;  %709 = vst [vmem:[%s2097_s24 + $0xf0] sm:$0xff] %v677_v47  ;;  %v744_v13 = vmul.f32 %v522_v30, %v2084_v1  ;;  %v743_v17 = vmul.f32 %v520_v33, %v2064_v28 }
 0x157   : > { %1317 = shalt.err (!%p1314_p7)
}
 0x158   : > { %s1318_s29 = scalar_lea.hbm %s2244_s17, 4096  ;;  %s1322_s6 = scalar_lea.hbm %s2463_s4, 8192 }
 0x159   : > { %p1319_p12 = scmp.ne.s32.totalorder %s2244_s17, %s1318_s29  ;;  %p1323_p11 = scmp.lt.u32.totalorder %s2244_s17, %s2463_s4 }
 0x15a   : > { %p1324_p13 = scmp.lt.u32.totalorder %s1322_s6, %s1318_s29  ;;  %p1326_p2 = scmp.lt.u32.totalorder %s1318_s29, %s2244_s17 }
 0x15b   : > { %p1320_p1 = pnand %p1319_p12, %p2543_p6 }
 0x15c   : > { %p1325_p0 = por %p1324_p13, %p1323_p11 }
 0x15d   : > { %p1321_p8 = pneg %p1320_p1 }
 0x15e   : > { %p1327_p10 = por %p1326_p2, %p1325_p0 }
 0x160   : > { %p1328_p3 = pnand %p1327_p10, %p1321_p8 }
 0x162   : > { %1331 = shalt.err (!%p1328_p3)
}
 0x163   : > { %s1440_s3 = smov 128   ;;  %s1441_s26 = smov 8   ;;  %v776_v58 = vadd.f32 %v744_v13, %v712_v56  ;;  %v775_v40 = vadd.f32 %v743_v17, %v1806_v20  ;;  %v526_v41 = vpop.permute.xlu1 %525  ;;  %v524_v48 = vpop.permute.xlu0 %523  ;;  %v2544_v19 = vld [vmem:[#allocation24_spill] sm:$0xff]  ;;  %v2545_v22 = vld [vmem:[#allocation25_spill] sm:$0xff]  ;;  %v2546_v44 = vld [vmem:[#allocation22_spill] sm:$0xff] }
 0x164   : > { %1102 = dma.vmem_to_hbm [thread:$0]  (%p2543_p6), %s2246_s12, 4096, %s2244_s17, %s840_s2, %s1440_s3, %s1440_s3, %s1441_s26   ;;  %v746_v49 = vmul.f32 %v526_v41, %v2082_v0  ;;  %v745_v60 = vmul.f32 %v524_v48, %v2062_v29  ;;  %v722_v53 = vmul.f32 %v1774_v9, %v2544_v19  ;;  %v721_v6 = vmul.f32 %v1776_v10, %v2545_v22  ;;  %v2547_v45 = vld [vmem:[#allocation23_spill] sm:$0xff]  ;;  %v2548_v38 = vld [vmem:[#allocation26_spill] sm:$0xff]  ;;  %v2550_v13 = vld [vmem:[#allocation28_spill] sm:$0xff] }
 0x165   : > { %s2283_s24 = scalar_lea.vmem [#allocation11], %s1710_s15  ;;  %v724_v39 = vmul.f32 %v1778_v11, %v2548_v38  ;;  %v2549_v59 = vld [vmem:[#allocation27_spill] sm:$0xff]  ;;  %v726_v17 = vmul.f32 %v1791_v15, %v2550_v13  ;;  %s2403_s16 = scalar_lea.hbm %s2464_s5, %s1087_s25 }
 0x166   : > { %808 = vst [vmem:[%s2283_s24 + $0x8] sm:$0xff] %v776_v58  ;;  %807 = vst [vmem:[%s2283_s24] sm:$0xff] %v775_v40  ;;  %v778_v61 = vadd.f32 %v746_v49, %v1810_v21  ;;  %v777_v20 = vadd.f32 %v745_v60, %v1823_v25  ;;  %v723_v37 = vmul.f32 %v1780_v12, %v2549_v59  ;;  %v2551_v58 = vld [vmem:[#allocation29_spill] sm:$0xff]  ;;  %v2558_v59 = vld [vmem:[#allocation36_spill] sm:$0xff]  ;;  %s880_s15 = sshll.u32 %s2283_s24, 4  ;;  %s845_s17 = scalar_lea.sflag [#allocation12], %s1707_s13  ;;  %s2405_s15 = int_to_ptr.vmem [resolvable:$true] %s880_s15 }
 0x167   : > { %v530_v62 = vpop.permute.xlu1 %529  ;;  %v528_v24 = vpop.permute.xlu0 %527  ;;  %v725_v40 = vmul.f32 %v1793_v16, %v2551_v58  ;;  %v2560_v58 = vld [vmem:[#allocation38_spill] sm:$0xff]  ;;  %s1332_s2 = scalar_lea.vmem %s2405_s15, 4096  ;;  %s1442_s11 = smov [#allocation11]  }
 0x168   : > { %810 = vst [vmem:[%s2283_s24 + $0x18] sm:$0xff] %v778_v61  ;;  %809 = vst [vmem:[%s2283_s24 + $0x10] sm:$0xff] %v777_v20  ;;  %v748_v2 = vmul.f32 %v530_v62, %v2107_v63  ;;  %v747_v3 = vmul.f32 %v528_v24, %v2109_v23  ;;  %v2552_v62 = vld [vmem:[#allocation30_spill] sm:$0xff]  ;;  %p1333_p4 = scmp.ne.s32.totalorder %s2405_s15, %s1332_s2  ;;  %s1336_s21 = sshll.u32 %s1442_s11, 4  ;;  %s1337_s21 = int_to_ptr.vmem [resolvable:$false] %s1336_s21 }
 0x169   : > { %v728_v24 = vmul.f32 %v1789_v14, %v2552_v62  ;;  %s1338_s22 = scalar_lea.vmem %s1337_s21, 8192  ;;  %p1339_p7 = scmp.lt.s32.totalorder %s2405_s15, %s1337_s21 }
 0x16a   : > { %v780_v50 = vadd.f32 %v748_v2, %v1827_v26  ;;  %v779_v51 = vadd.f32 %v747_v3, %v1831_v27  ;;  %v2553_v2 = vld [vmem:[#allocation31_spill] sm:$0xff]  ;;  %p1334_p9 = pnand %p1333_p4, %p2543_p6  ;;  %p1340_p12 = scmp.lt.s32.totalorder %s1338_s22, %s1332_s2 }
 0x16b   : > { %v534_v42 = vpop.permute.xlu1 %533  ;;  %v532_v43 = vpop.permute.xlu0 %531  ;;  %v727_v3 = vmul.f32 %v1772_v8, %v2553_v2  ;;  %v2562_v2 = vld [vmem:[#allocation40_spill] sm:$0xff] }
 0x16c   : > { %812 = vst [vmem:[%s2283_s24 + $0x28] sm:$0xff] %v780_v50  ;;  %811 = vst [vmem:[%s2283_s24 + $0x20] sm:$0xff] %v779_v51  ;;  %v750_v21 = vmul.f32 %v534_v42, %v2129_v4  ;;  %v749_v25 = vmul.f32 %v532_v43, %v2131_v5  ;;  %p1335_p5 = pneg %p1334_p9  ;;  %p1341_p1 = por %p1340_p12, %p1339_p7 }
 0x16e   : > { %v782_v35 = vadd.f32 %v750_v21, %v1841_v31  ;;  %v781_v36 = vadd.f32 %v749_v25, %v1844_v32  ;;  %p1342_p8 = pnand %p1341_p1, %p1335_p5 }
 0x16f   : > { %v538_v34 = vpop.permute.xlu1 %537  ;;  %v536_v52 = vpop.permute.xlu0 %535 }
 0x170   : > { %814 = vst [vmem:[%s2283_s24 + $0x38] sm:$0xff] %v782_v35  ;;  %813 = vst [vmem:[%s2283_s24 + $0x30] sm:$0xff] %v781_v36  ;;  %v752_v26 = vmul.f32 %v538_v34, %v2084_v1  ;;  %v751_v27 = vmul.f32 %v536_v52, %v2064_v28  ;;  %v2554_v35 = vld [vmem:[#allocation32_spill] sm:$0xff]  ;;  %v2555_v34 = vld [vmem:[#allocation33_spill] sm:$0xff] }
 0x171   : > { %v730_v36 = vmul.f32 %v1774_v9, %v2554_v35  ;;  %v729_v52 = vmul.f32 %v1776_v10, %v2555_v34  ;;  %v2565_v35 = vld [vmem:[#allocation43_spill] sm:$0xff] }
 0x172   : > { %v784_v31 = vadd.f32 %v752_v26, %v2546_v44  ;;  %v783_v32 = vadd.f32 %v751_v27, %v2547_v45  ;;  %v2556_v44 = vld [vmem:[#allocation34_spill] sm:$0xff]  ;;  %v2557_v45 = vld [vmem:[#allocation35_spill] sm:$0xff] }
 0x173   : > { %v542_v7 = vpop.permute.xlu1 %541  ;;  %v540_v18 = vpop.permute.xlu0 %539 }
 0x174   : > { %816 = vst [vmem:[%s2283_s24 + $0x48] sm:$0xff] %v784_v31  ;;  %815 = vst [vmem:[%s2283_s24 + $0x40] sm:$0xff] %v783_v32  ;;  %v754_v54 = vmul.f32 %v542_v7, %v2082_v0  ;;  %v753_v55 = vmul.f32 %v540_v18, %v2062_v29  ;;  %v732_v31 = vmul.f32 %v1778_v11, %v2556_v44 }
 0x175   : > { %v731_v32 = vmul.f32 %v1780_v12, %v2557_v45 }
 0x176   : > { %v786_v46 = vadd.f32 %v754_v54, %v722_v53  ;;  %v785_v56 = vadd.f32 %v753_v55, %v721_v6 }
 0x177   : > { %v546_v57 = vpop.permute.xlu1 %545  ;;  %v544_v47 = vpop.permute.xlu0 %543 }
 0x178   : > { %818 = vst [vmem:[%s2283_s24 + $0x58] sm:$0xff] %v786_v46  ;;  %817 = vst [vmem:[%s2283_s24 + $0x50] sm:$0xff] %v785_v56  ;;  %v756_v30 = vmul.f32 %v546_v57, %v2107_v63  ;;  %v755_v33 = vmul.f32 %v544_v47, %v2109_v23  ;;  %v2559_v46 = vld [vmem:[#allocation37_spill] sm:$0xff] }
 0x179   : > { %v733_v56 = vmul.f32 %v1793_v16, %v2559_v46 }
 0x17a   : > { %v788_v41 = vadd.f32 %v756_v30, %v724_v39  ;;  %v787_v48 = vadd.f32 %v755_v33, %v723_v37  ;;  %v734_v37 = vmul.f32 %v1791_v15, %v2558_v59 }
 0x17b   : > { %v550_v49 = vpop.permute.xlu1 %549  ;;  %v548_v60 = vpop.permute.xlu0 %547 }
 0x17c   : > { %820 = vst [vmem:[%s2283_s24 + $0x68] sm:$0xff] %v788_v41  ;;  %819 = vst [vmem:[%s2283_s24 + $0x60] sm:$0xff] %v787_v48  ;;  %v758_v61 = vmul.f32 %v550_v49, %v2129_v4  ;;  %v757_v20 = vmul.f32 %v548_v60, %v2131_v5  ;;  %v2561_v41 = vld [vmem:[#allocation39_spill] sm:$0xff] }
 0x17d   : > { %v735_v48 = vmul.f32 %v1772_v8, %v2561_v41 }
 0x17e   : > { %v790_v50 = vadd.f32 %v758_v61, %v726_v17  ;;  %v789_v51 = vadd.f32 %v757_v20, %v725_v40  ;;  %v736_v40 = vmul.f32 %v1789_v14, %v2560_v58 }
 0x17f   : > { %v554_v42 = vpop.permute.xlu1 %553  ;;  %v552_v43 = vpop.permute.xlu0 %551 }
 0x180   : > { %822 = vst [vmem:[%s2283_s24 + $0x78] sm:$0xff] %v790_v50  ;;  %821 = vst [vmem:[%s2283_s24 + $0x70] sm:$0xff] %v789_v51  ;;  %v760_v21 = vmul.f32 %v554_v42, %v2084_v1  ;;  %v759_v25 = vmul.f32 %v552_v43, %v2064_v28  ;;  %v2563_v50 = vld [vmem:[#allocation41_spill] sm:$0xff] }
 0x181   : > { %v737_v14 = vmul.f32 %v1776_v10, %v2563_v50 }
 0x182   : > { %v792_v26 = vadd.f32 %v760_v21, %v728_v24  ;;  %v791_v27 = vadd.f32 %v759_v25, %v727_v3  ;;  %v738_v3 = vmul.f32 %v1774_v9, %v2562_v2  ;;  %v2564_v25 = vld [vmem:[#allocation42_spill] sm:$0xff]  ;;  %v739_v9 = vmul.f32 %v1780_v12, %v2565_v35 }
 0x183   : > { %v558_v19 = vpop.permute.xlu1 %557  ;;  %v556_v53 = vpop.permute.xlu0 %555 }
 0x184   : > { %824 = vst [vmem:[%s2283_s24 + $0x88] sm:$0xff] %v792_v26  ;;  %823 = vst [vmem:[%s2283_s24 + $0x80] sm:$0xff] %v791_v27  ;;  %v762_v22 = vmul.f32 %v558_v19, %v2082_v0  ;;  %v761_v6 = vmul.f32 %v556_v53, %v2062_v29  ;;  %v2566_v26 = vld [vmem:[#allocation44_spill] sm:$0xff]  ;;  %v2567_v27 = vld [vmem:[#allocation45_spill] sm:$0xff] }
 0x185   : > { %v741_v12 = vmul.f32 %v1793_v16, %v2567_v27 }
 0x186   : > { %v794_v7 = vadd.f32 %v762_v22, %v730_v36  ;;  %v793_v18 = vadd.f32 %v761_v6, %v729_v52 }
 0x187   : > { %v562_v54 = vpop.permute.xlu1 %561  ;;  %v560_v55 = vpop.permute.xlu0 %559 }
 0x188   : > { %826 = vst [vmem:[%s2283_s24 + $0x98] sm:$0xff] %v794_v7  ;;  %825 = vst [vmem:[%s2283_s24 + $0x90] sm:$0xff] %v793_v18  ;;  %v764_v38 = vmul.f32 %v562_v54, %v2107_v63  ;;  %v763_v39 = vmul.f32 %v560_v55, %v2109_v23 }
 0x18a   : > { %v796_v57 = vadd.f32 %v764_v38, %v732_v31  ;;  %v795_v47 = vadd.f32 %v763_v39, %v731_v32 }
 0x18b   : > { %v566_v30 = vpop.permute.xlu1 %565  ;;  %v564_v33 = vpop.permute.xlu0 %563 }
 0x18c   : > { %828 = vst [vmem:[%s2283_s24 + $0xa8] sm:$0xff] %v796_v57  ;;  %827 = vst [vmem:[%s2283_s24 + $0xa0] sm:$0xff] %v795_v47  ;;  %v766_v13 = vmul.f32 %v566_v30, %v2129_v4  ;;  %v765_v17 = vmul.f32 %v564_v33, %v2131_v5 }
 0x18e   : > { %v798_v49 = vadd.f32 %v766_v13, %v734_v37  ;;  %v797_v60 = vadd.f32 %v765_v17, %v733_v56 }
 0x18f   : > { %v570_v61 = vpop.permute.xlu1 %569  ;;  %v568_v20 = vpop.permute.xlu0 %567 }
 0x190   : > { %830 = vst [vmem:[%s2283_s24 + $0xb8] sm:$0xff] %v798_v49  ;;  %829 = vst [vmem:[%s2283_s24 + $0xb0] sm:$0xff] %v797_v60  ;;  %v768_v62 = vmul.f32 %v570_v61, %v2084_v1  ;;  %v767_v24 = vmul.f32 %v568_v20, %v2064_v28  ;;  %v740_v28 = vmul.f32 %v1778_v11, %v2564_v25 }
 0x191   : > { %v742_v11 = vmul.f32 %v1791_v15, %v2566_v26 }
 0x192   : > { %v800_v8 = vadd.f32 %v768_v62, %v736_v40  ;;  %v799_v51 = vadd.f32 %v767_v24, %v735_v48 }
 0x193   : > { %v574_v42 = vpop.permute.xlu1 %573  ;;  %v572_v43 = vpop.permute.xlu0 %571 }
 0x194   : > { %832 = vst [vmem:[%s2283_s24 + $0xc8] sm:$0xff] %v800_v8  ;;  %831 = vst [vmem:[%s2283_s24 + $0xc0] sm:$0xff] %v799_v51  ;;  %v770_v21 = vmul.f32 %v574_v42, %v2082_v0  ;;  %v769_v1 = vmul.f32 %v572_v43, %v2062_v29 }
 0x196   : > { %v802_v10 = vadd.f32 %v770_v21, %v738_v3  ;;  %v801_v36 = vadd.f32 %v769_v1, %v737_v14 }
 0x197   : > { %v578_v34 = vpop.permute.xlu1 %577  ;;  %v576_v52 = vpop.permute.xlu0 %575 }
 0x198   : > { %834 = vst [vmem:[%s2283_s24 + $0xd8] sm:$0xff] %v802_v10  ;;  %833 = vst [vmem:[%s2283_s24 + $0xd0] sm:$0xff] %v801_v36  ;;  %v772_v0 = vmul.f32 %v578_v34, %v2107_v63  ;;  %v771_v29 = vmul.f32 %v576_v52, %v2109_v23 }
 0x19a   : > { %v804_v19 = vadd.f32 %v772_v0, %v740_v28  ;;  %v803_v53 = vadd.f32 %v771_v29, %v739_v9 }
 0x19b   : > { %v582_v22 = vpop.permute.xlu1 %581  ;;  %v580_v6 = vpop.permute.xlu0 %579 }
 0x19c   : > { %836 = vst [vmem:[%s2283_s24 + $0xe8] sm:$0xff] %v804_v19  ;;  %835 = vst [vmem:[%s2283_s24 + $0xe0] sm:$0xff] %v803_v53  ;;  %v774_v63 = vmul.f32 %v582_v22, %v2129_v4  ;;  %v773_v23 = vmul.f32 %v580_v6, %v2131_v5 }
 0x19e   : > { %v806_v44 = vadd.f32 %v774_v63, %v742_v11  ;;  %v805_v31 = vadd.f32 %v773_v23, %v741_v12 }
 0x1a0   : > { %838 = vst [vmem:[%s2283_s24 + $0xf8] sm:$0xff] %v806_v44  ;;  %837 = vst [vmem:[%s2283_s24 + $0xf0] sm:$0xff] %v805_v31 }
 0x1a1   : > { %1345 = shalt.err (!%p1342_p8)
}
 0x1a2   : > { %s1346_s25 = scalar_lea.hbm %s2403_s16, 4096  ;;  %s1350_s29 = scalar_lea.hbm %s2464_s5, 8192 }
 0x1a3   : > { %p1347_p11 = scmp.ne.s32.totalorder %s2403_s16, %s1346_s25  ;;  %p1351_p2 = scmp.lt.u32.totalorder %s2403_s16, %s2464_s5 }
 0x1a4   : > { %p1352_p10 = scmp.lt.u32.totalorder %s1350_s29, %s1346_s25  ;;  %p1354_p4 = scmp.lt.u32.totalorder %s1346_s25, %s2403_s16 }
 0x1a5   : > { %p1348_p13 = pnand %p1347_p11, %p2543_p6 }
 0x1a6   : > { %p1353_p3 = por %p1352_p10, %p1351_p2 }
 0x1a7   : > { %p1349_p0 = pneg %p1348_p13 }
 0x1a8   : > { %p1355_p9 = por %p1354_p4, %p1353_p3 }
 0x1aa   : > { %p1356_p5 = pnand %p1355_p9, %p1349_p0 }
 0x1ac   : > { %1359 = shalt.err (!%p1356_p5)
}
 0x1ad   : > { %1103 = dma.vmem_to_hbm [thread:$0]  (%p2543_p6), %s2405_s15, 4096, %s2403_s16, %s845_s17, %s1440_s3, %s1440_s3, %s1441_s26  }
 0x1ae PF: > { %s895_s6 = sand.u32 1, %s1410_s18   ;;  %p2568_p7 = scmp.ne.s32.totalorder %s2501_s27, 0 }
 0x1af   : > { %p2569_p12 = scmp.ge.s32.totalorder %s1430_s23, 2  ;;  %s896_s28 = scalar_lea.sflag [#allocation4], %s895_s6 }
 0x1b1   : > { %p1121_p1 = pnand %p2569_p12, %p2568_p7 }
 0x1b3   : > { %1401 = dma.done.wait (!%p1121_p1), %s896_s28, 4096  }
 0x1b4   : > { %1403 = vsyncadd (!%p1121_p1), %s896_s28, 4294963200  ;;  %s905_s9 = scalar_lea.sflag [#allocation12], %s895_s6 }
 0x1b5   : > { %1405 = dma.done.wait (!%p1121_p1), %s905_s9, 4096  }
 0x1b6   : > { %1407 = vsyncadd (!%p1121_p1), %s905_s9, 4294963200  ;;  %s29_s23 = sadd.s32 1, %s1430_s23   ;;  %s2570_s13 = sld [smem:[#allocation21_spill]] }
 0x1b7   : > { %p26_p8 = scmp.ge.s32.totalorder %s29_s23, 4   ;;  %s2571_s21 = sld [smem:[#allocation19_spill]] }
 0x1b8   : > { %s2572_s22 = sld [smem:[#allocation20_spill]]  ;;  %s2573_s18 = smov %s1414_s19 }
 0x1b9   : > { %s2574_s19 = smov %s1418_s20  ;;  %28 = sbr.rel (!%p26_p8) target bundleno = 15 (0xf), region = 121 }
 0x1bc   : > { %s2575_s20 = smov %s2570_s13 }
 0x1c0   :  { %910 = vsyncpa [#allocation3], 1 }
 0x1c1   :  { %912 = vsyncpa [#allocation3 + $0x1], 1 }
 0x1c2   :  { %913 = vsyncpa [#allocation6], 1 }
 0x1c3   :  { %915 = vsyncpa [#allocation6 + $0x1], 1 }
 0x1c4   :  { %916 = vsyncpa [#allocation9], 1 }
 0x1c5   :  { %917 = vsyncpa [#allocation4], 1 }
 0x1c6   :  { %919 = vsyncpa [#allocation4 + $0x1], 1 }
 0x1c7   :  { %920 = vsyncpa [#allocation12], 1 }
 0x1c8   :  { %922 = vsyncpa [#allocation12 + $0x1], 1 }

// kernel: tpu_custom_call.1
= control target key start
LH: loop header
LB: loop body
LE: loop exit
PB: predicated region body
PF: predicated region fallthrough
CT: control target
= control target key end

     0   :  { %s2587_s0 = inlined_call_operand.hbm [shape: f32[8,64,128], index: 0, kind: input, shape index: {}]   ;;  %s2588_s1 = inlined_call_operand.hbm [shape: f32[8,64,128], index: 1, kind: input, shape index: {}]   ;;  %s2589_s2 = inlined_call_operand.hbm [shape: f32[1,64,128], index: 2, kind: input, shape index: {}]   ;;  %s2590_s3 = inlined_call_operand.hbm [shape: f32[1,64,128], index: 3, kind: input, shape index: {}]   ;;  %s2591_s4 = inlined_call_operand.hbm [shape: f32[8,64,128], index: 4, kind: output, shape index: {0}]   ;;  %s2592_s5 = inlined_call_operand.hbm [shape: f32[8,64,128], index: 5, kind: output, shape index: {1}]  }
   0x1   :  { %2624 = sst [smem:[#allocation46_spill]] %s2587_s0 }
   0x2   :  { %2625 = sst [smem:[#allocation47_spill]] %s2589_s2 }
   0x3   :  { %2626 = sst [smem:[#allocation48_spill]] %s2590_s3 }
   0x4   :  { %11 = vsyncpa [#allocation3], 0 }
   0x5   :  { %13 = vsyncpa [#allocation3 + $0x1], 0 }
   0x6   :  { %14 = vsyncpa [#allocation6], 0 }
   0x7   :  { %16 = vsyncpa [#allocation6 + $0x1], 0 }
   0x8   :  { %17 = vsyncpa [#allocation9], 0 }
   0x9   :  { %18 = vsyncpa [#allocation4], 0 }
   0xa   :  { %20 = vsyncpa [#allocation4 + $0x1], 0 }
   0xb   :  { %21 = vsyncpa [#allocation12], 0 }
   0xc   :  { %23 = vsyncpa [#allocation12 + $0x1], 0  ;;  %s1601_s18 = smov 0   ;;  %s1603_s19 = smov 0  }
   0xd   :  { %s1605_s20 = smov 0   ;;  %s1607_s21 = smov 0  }
   0xe   :  { %s1609_s22 = smov 0   ;;  %s1611_s23 = smov 0  }
   0xf LB: > { %2627 = sst [smem:[#allocation19_spill]] %s1554_s22  ;;  %s1632_s24 = sadd.s32 4294967295, %s1558_s23   ;;  %s1558_s23 = sphi %s1611_s23, %s29_s23   ;;  %s1554_s22 = sphi %s1609_s22, %s2700_s22   ;;  %s1550_s21 = sphi %s1607_s21, %s2699_s21   ;;  %s1546_s20 = sphi %s1605_s20, %s2703_s20   ;;  %s1542_s19 = sphi %s1603_s19, %s2702_s19   ;;  %s1538_s18 = sphi %s1601_s18, %s2701_s18  }
  0x10   : > { %s1180_s25 = sadd.s32 4294967294, %s1558_s23   ;;  %p63_p0 = scmp.ne.s32.totalorder %s1542_s19, %s1538_s18 }
  0x11   : > { %p2593_p1 = scmp.eq.s32.totalorder %s1632_s24, 0  ;;  %p175_p3 = scmp.eq.s32.totalorder %s1180_s25, 1 }
  0x12   : > { %p1181_p5 = scmp.ge.s32.totalorder %s1558_s23, 1  ;;  %p210_p7 = scmp.lt.s32.totalorder %s1558_s23, 3 }
  0x13   : > { %p1641_p4 = por %p2593_p1, %p63_p0  ;;  %p1646_p6 = por %p175_p3, %p63_p0 }
  0x14   : > { %p1651_p8 = pnand %p1181_p5, %p210_p7  ;;  %s1560_s29 = smov [#allocation7]  }
  0x15   : > { %s2628_s26 = scalar_select %p1641_p4, 1, 0 }
  0x16   : > { %s2629_s27 = scalar_select %p1646_p6, 1, 0 }
  0x17   : > { %s225_s30 = sshll.u32 %s1560_s29, 4  ;;  %p1234_p9 = pneg %p1651_p8  ;;  %s1655_s30 = int_to_ptr.vmem [resolvable:$true] %s225_s30 }
  0x18   : > { %s1561_s7 = smov [#allocation8]   ;;  %s2632_s2 = sld [smem:[#allocation47_spill]] }
  0x19   : > { %p1662_p11 = pnand %p1234_p9, %p2593_p1  ;;  %s241_s8 = sshll.u32 %s1561_s7, 4  ;;  %s1666_s8 = int_to_ptr.vmem [resolvable:$true] %s241_s8 }
  0x1b   : > { %p1318_p13 = pneg %p1662_p11 }
  0x1e   : > { %s1316_s11 = scalar_lea.hbm %s2632_s2, 1024 }
  0x1f   : > { %p1317_p12 = scmp.ne.s32.totalorder %s2632_s2, %s1316_s11  ;;  %p1323_p5 = scmp.lt.u32.totalorder %s1316_s11, %s2632_s2 }
  0x21   : > { %p1319_p0 = pnand %p1318_p13, %p1317_p12 }
  0x23   : > { %p1320_p3 = pneg %p1319_p0 }
  0x25   : > { %p1325_p7 = pnand %p1323_p5, %p1320_p3 }
  0x27   : > { %1328 = shalt.err (!%p1325_p7)
}
  0x28   : > { %s1329_s16 = scalar_lea.vmem %s1655_s30, 1024  ;;  %p1337_p2 = scmp.lt.s32.totalorder %s1655_s30, %s1655_s30 }
  0x29   : > { %p1330_p9 = scmp.ne.s32.totalorder %s1655_s30, %s1329_s16  ;;  %p1338_p12 = scmp.lt.s32.totalorder %s1329_s16, %s1329_s16 }
  0x2b   : > { %p1332_p10 = pnand %p1330_p9, %p1318_p13  ;;  %p1339_p0 = por %p1338_p12, %p1337_p2 }
  0x2d   : > { %p1333_p1 = pneg %p1332_p10 }
  0x2f   : > { %p1340_p6 = pnand %p1339_p0, %p1333_p1 }
  0x31   : > { %1343 = shalt.err (!%p1340_p6)
}
  0x32   : > { %s2594_s17 = smov 128   ;;  %s2596_s25 = smov 8  }
  0x33   : > { %1237 = dma.hbm_to_vmem [thread:$0]  (!%p1662_p11), %s2632_s2, 1024, %s1655_s30, [#allocation6], %s2594_s17, %s2594_s17, %s2596_s25  }
  0x34   : > { %s2633_s3 = sld [smem:[#allocation48_spill]] }
  0x3a   : > { %s1344_s11 = scalar_lea.hbm %s2633_s3, 1024 }
  0x3b   : > { %p1345_p1 = scmp.ne.s32.totalorder %s2633_s3, %s1344_s11  ;;  %p1351_p10 = scmp.lt.u32.totalorder %s1344_s11, %s2633_s3 }
  0x3d   : > { %p1347_p2 = pnand %p1345_p1, %p1318_p13 }
  0x3f   : > { %p1348_p6 = pneg %p1347_p2 }
  0x41   : > { %p1353_p3 = pnand %p1351_p10, %p1348_p6 }
  0x43   : > { %1356 = shalt.err (!%p1353_p3)
}
  0x44   : > { %s1357_s30 = scalar_lea.vmem %s1666_s8, 1024  ;;  %p1365_p12 = scmp.lt.s32.totalorder %s1666_s8, %s1666_s8 }
  0x45   : > { %p1358_p5 = scmp.ne.s32.totalorder %s1666_s8, %s1357_s30  ;;  %p1366_p0 = scmp.lt.s32.totalorder %s1357_s30, %s1357_s30 }
  0x47   : > { %p1360_p7 = pnand %p1358_p5, %p1318_p13  ;;  %p1367_p1 = por %p1366_p0, %p1365_p12 }
  0x49   : > { %p1361_p9 = pneg %p1360_p7 }
  0x4b   : > { %p1368_p2 = pnand %p1367_p1, %p1361_p9 }
  0x4d   : > { %1371 = shalt.err (!%p1368_p2)
}
  0x4e   : > { %1240 = dma.hbm_to_vmem [thread:$0]  (!%p1662_p11), %s2633_s3, 1024, %s1666_s8, [#allocation9], %s2594_s17, %s2594_s17, %s2596_s25  }
  0x4f   : > { %s38_s6 = sadd.s32 1, %s1554_s22  ;;  %s50_s7 = sadd.s32 1, %s1546_s20 }
  0x50   : > { %p39_p13 = scmp.ge.s32.totalorder %s38_s6, 2  ;;  %p57_p6 = scmp.ne.s32.totalorder %s1546_s20, %s1542_s19 }
  0x51   : > { %p58_p10 = scmp.eq.s32.totalorder %s1558_s23, 0  ;;  %p1257_p3 = scmp.lt.s32.totalorder %s1558_s23, 2 }
  0x52   : > { %s2705_s6 = smov (%p39_p13, %s38_s6), 0  ;;  %p2635_p7 = scmp.eq.s32.totalorder %s1632_s24, 1 }
  0x53   : > { %2634 = sst [smem:[#allocation20_spill]] %s2705_s6  ;;  %p59_p5 = por %p58_p10, %p57_p6 }
  0x54   : > { %p1736_p9 = por %p2635_p7, %p57_p6  ;;  %s45_s10 = ssub.s32 %s1554_s22, %s2705_s6 }
  0x55   : > { %s255_s11 = sand.u32 1, %s1546_s20   ;;  %p48_p12 = scmp.eq.s32.totalorder %s45_s10, 0 }
  0x56   : > { %s2636_s9 = scalar_select %p1736_p9, 1, 0 }
  0x57   : > { %s1743_s8 = sshll.u32 %s255_s11, 8  ;;  %s1211_s12 = sshll.u32 %s1554_s22, 12 }
  0x58   : > { %s1747_s13 = scalar_select %p48_p12, %s1546_s20, %s50_s7  }
  0x59   : > { %s2638_s0 = sld [smem:[#allocation46_spill]]  ;;  %s259_s16 = scalar_lea.vmem [#allocation2], %s1743_s8 }
  0x5a   : > { %2637 = sst [smem:[#allocation21_spill]] %s1747_s13  ;;  %s269_s29 = sshll.u32 %s259_s16, 4  ;;  %s1761_s29 = int_to_ptr.vmem [resolvable:$true] %s269_s29 }
  0x5b   : > { %p1757_p11 = pnand %p1257_p3, %p59_p5  ;;  %s1766_s14 = scalar_lea.hbm %s2588_s1, %s1211_s12 }
  0x5c   : > { %s1768_s15 = scalar_lea.sflag [#allocation3], %s255_s11 }
  0x5d   : > { %p1374_p1 = pneg %p1757_p11 }
  0x5f   : > { %s1752_s30 = scalar_lea.hbm %s2638_s0, %s1211_s12  ;;  %s1377_s3 = scalar_lea.hbm %s2638_s0, 8192 }
  0x60   : > { %s1372_s25 = scalar_lea.hbm %s1752_s30, 4096  ;;  %p1378_p6 = scmp.lt.u32.totalorder %s1752_s30, %s2638_s0 }
  0x61   : > { %p1373_p0 = scmp.ne.s32.totalorder %s1752_s30, %s1372_s25  ;;  %p1379_p10 = scmp.lt.u32.totalorder %s1377_s3, %s1372_s25 }
  0x62   : > { %p1381_p5 = scmp.lt.u32.totalorder %s1372_s25, %s1752_s30 }
  0x63   : > { %p1375_p2 = pnand %p1374_p1, %p1373_p0  ;;  %p1380_p3 = por %p1379_p10, %p1378_p6 }
  0x65   : > { %p1376_p13 = pneg %p1375_p2  ;;  %p1382_p7 = por %p1381_p5, %p1380_p3 }
  0x67   : > { %p1383_p12 = pnand %p1382_p7, %p1376_p13 }
  0x69   : > { %1386 = shalt.err (!%p1383_p12)
}
  0x6a   : > { %s1387_s17 = scalar_lea.vmem %s1761_s29, 4096  ;;  %s1564_s2 = smov [#allocation2]  }
  0x6b   : > { %p1388_p0 = scmp.ne.s32.totalorder %s1761_s29, %s1387_s17  ;;  %s1392_s11 = sshll.u32 %s1564_s2, 4  ;;  %s1393_s11 = int_to_ptr.vmem [resolvable:$false] %s1392_s11 }
  0x6c   : > { %s1394_s22 = scalar_lea.vmem %s1393_s11, 8192  ;;  %p1395_p4 = scmp.lt.s32.totalorder %s1761_s29, %s1393_s11 }
  0x6d   : > { %p1390_p2 = pnand %p1388_p0, %p1374_p1  ;;  %p1396_p6 = scmp.lt.s32.totalorder %s1394_s22, %s1387_s17 }
  0x6f   : > { %p1391_p9 = pneg %p1390_p2  ;;  %p1397_p10 = por %p1396_p6, %p1395_p4 }
  0x71   : > { %p1398_p3 = pnand %p1397_p10, %p1391_p9 }
  0x73   : > { %1401 = shalt.err (!%p1398_p3)
}
  0x74   : > { %s2640_s3 = smov 8   ;;  %s2641_s25 = smov 128  }
  0x75   : > { %1244 = dma.hbm_to_vmem [thread:$0]  (!%p1757_p11), %s1752_s30, 4096, %s1761_s29, %s1768_s15, %s2641_s25, %s2641_s25, %s2640_s3  }
  0x76   : > { %s283_s6 = scalar_lea.vmem [#allocation5], %s1743_s8  ;;  %s279_s7 = sand.u32 1, %s1558_s23  }
  0x77   : > { %s293_s12 = sshll.u32 %s283_s6, 4  ;;  %s1803_s16 = scalar_lea.sflag [#allocation6], %s279_s7  ;;  %s1801_s12 = int_to_ptr.vmem [resolvable:$true] %s293_s12 }
  0x78   : > { %s1402_s17 = scalar_lea.hbm %s1766_s14, 4096  ;;  %s1407_s22 = scalar_lea.hbm %s2588_s1, 8192 }
  0x79   : > { %p1403_p4 = scmp.ne.s32.totalorder %s1766_s14, %s1402_s17  ;;  %p1408_p5 = scmp.lt.u32.totalorder %s1766_s14, %s2588_s1 }
  0x7a   : > { %p1409_p7 = scmp.lt.u32.totalorder %s1407_s22, %s1402_s17  ;;  %p1411_p0 = scmp.lt.u32.totalorder %s1402_s17, %s1766_s14 }
  0x7b   : > { %p1405_p9 = pnand %p1403_p4, %p1374_p1 }
  0x7c   : > { %p1410_p12 = por %p1409_p7, %p1408_p5 }
  0x7d   : > { %p1406_p13 = pneg %p1405_p9 }
  0x7e   : > { %p1412_p2 = por %p1411_p0, %p1410_p12 }
  0x80   : > { %p1413_p6 = pnand %p1412_p2, %p1406_p13 }
  0x82   : > { %1416 = shalt.err (!%p1413_p6)
}
  0x83   : > { %s1417_s8 = scalar_lea.vmem %s1801_s12, 4096  ;;  %s1565_s30 = smov [#allocation5]  }
  0x84   : > { %p1418_p10 = scmp.ne.s32.totalorder %s1801_s12, %s1417_s8  ;;  %s1422_s29 = sshll.u32 %s1565_s30, 4  ;;  %s1423_s29 = int_to_ptr.vmem [resolvable:$false] %s1422_s29 }
  0x85   : > { %s1424_s0 = scalar_lea.vmem %s1423_s29, 8192  ;;  %p1425_p9 = scmp.lt.s32.totalorder %s1801_s12, %s1423_s29 }
  0x86   : > { %p1420_p3 = pnand %p1418_p10, %p1374_p1  ;;  %p1426_p5 = scmp.lt.s32.totalorder %s1424_s0, %s1417_s8 }
  0x88   : > { %p1421_p4 = pneg %p1420_p3  ;;  %p1427_p7 = por %p1426_p5, %p1425_p9 }
  0x8a   : > { %p1428_p12 = pnand %p1427_p7, %p1421_p4 }
  0x8c   : > { %1431 = shalt.err (!%p1428_p12)
}
  0x8d   : > { %1247 = dma.hbm_to_vmem [thread:$0]  (!%p1757_p11), %s1766_s14, 4096, %s1801_s12, %s1803_s16, %s2641_s25, %s2641_s25, %s2640_s3  }
  0x8e   : > { %305 = sbr.rel (%p1651_p8) target bundleno = 430 (0x1ae), region = 36 }
  0x95   : > { %s1835_s13 = sand.u32 1, %s1542_s19   ;;  %p2642_p1 = scmp.ne.s32.totalorder %s2628_s26, 0 }
  0x96   : > { %s1838_s15 = sshll.u32 %s1835_s13, 8  ;;  %s308_s10 = scalar_lea.sflag [#allocation3], %s1835_s13 }
  0x97   : > { %s1842_s6 = scalar_lea.vmem [#allocation2], %s1838_s15 }
  0x98   : > { %1513 = dma.done.wait (%p2642_p1), %s308_s10, 4096  }
  0x99   : > { %1515 = vsyncadd (%p2642_p1), %s308_s10, 4294963200  ;;  %s316_s28 = sand.u32 1, %s1632_s24   ;;  %s1850_s3 = scalar_lea.vmem [#allocation5], %s1838_s15 }
  0x9a   : > { %s317_s14 = scalar_lea.sflag [#allocation6], %s316_s28 }
  0x9b   : > { %1517 = dma.done.wait (%p2642_p1), %s317_s14, 4096  }
  0x9c   : > { %1519 = vsyncadd (%p2642_p1), %s317_s14, 4294963200  ;;  %p2643_p8 = scmp.eq.s32.totalorder %s1632_s24, 0 }
  0x9e   : > { %1521 = dma.done.wait (%p2643_p8), [#allocation6], 1024   ;;  %p2644_p11 = pmov %p2643_p8 }
  0x9f   : > { %p2645_p13 = pmov %p2643_p8 }
  0xa0   : > { %1523 = vsyncadd (%p2644_p11), [#allocation6], 4294966272 }
  0xa1   : > { %1525 = dma.done.wait (%p2645_p13), [#allocation9], 1024   ;;  %p2646_p0 = pmov %p2643_p8 }
  0xa2   : > { %v1865_v0 = vld [vmem:[%s1842_s6 + $0x10] sm:$0xff]  ;;  %v1868_v1 = vld [vmem:[%s1842_s6] sm:$0xff]  ;;  %s1566_s26 = smov 64   ;;  %v1875_v2 = vld [vmem:[%s1842_s6 + $0x18] sm:$0xff]  ;;  %s2225_s24 = scalar_lea.vmem [#allocation10], %s1838_s15 }
  0xa3   : > { %1527 = vsyncadd (%p2646_p0), [#allocation9], 4294966272  ;;  %491 = vrot.lane.b32.xlu1 %v1865_v0, %s1566_s26  ;;  %487 = vrot.lane.b32.xlu0 %v1868_v1, %s1566_s26  ;;  %v1878_v3 = vld [vmem:[%s1842_s6 + $0x8] sm:$0xff]  ;;  %v1888_v5 = vld [vmem:[%s1842_s6 + $0x20] sm:$0xff]  ;;  %s1215_s25 = sshll.u32 %s1550_s21, 12  ;;  %s989_s12 = sshll.u32 %s2225_s24, 4  ;;  %s2374_s12 = int_to_ptr.vmem [resolvable:$true] %s989_s12 }
  0xa4   : > { %v1885_v4 = vld [vmem:[%s1842_s6 + $0x28] sm:$0xff]  ;;  %v1895_v6 = vld [vmem:[%s1842_s6 + $0x38] sm:$0xff]  ;;  %v1898_v7 = vld [vmem:[%s1842_s6 + $0x30] sm:$0xff]  ;;  %s2372_s17 = scalar_lea.hbm %s2591_s4, %s1215_s25  ;;  %s968_s2 = scalar_lea.sflag [#allocation4], %s1835_s13 }
  0xa5   : > { %v1900_v8 = vld [vmem:[#allocation7] sm:$0xff]  ;;  %v1902_v9 = vld [vmem:[#allocation7 + $0x18] sm:$0xff]  ;;  %v1904_v10 = vld [vmem:[#allocation7 + $0x10] sm:$0xff]  ;;  %s1432_s11 = scalar_lea.vmem %s2374_s12, 4096  ;;  %p2671_p6 = scmp.ne.s32.totalorder %s2636_s9, 0 }
  0xa6   : > { %v1906_v11 = vld [vmem:[#allocation7 + $0x28] sm:$0xff]  ;;  %v1908_v12 = vld [vmem:[#allocation7 + $0x20] sm:$0xff]  ;;  %v1919_v15 = vld [vmem:[#allocation7 + $0x38] sm:$0xff]  ;;  %p1433_p2 = scmp.ne.s32.totalorder %s2374_s12, %s1432_s11  ;;  %s1567_s22 = smov [#allocation10]  }
  0xa7   : > { %493 = vrot.lane.b32.xlu1 %v1875_v2, %s1566_s26  ;;  %489 = vrot.lane.b32.xlu0 %v1878_v3, %s1566_s26  ;;  %v1915_v13 = vld [vmem:[%s1842_s6 + $0x48] sm:$0xff]  ;;  %v1921_v16 = vld [vmem:[#allocation7 + $0x30] sm:$0xff]  ;;  %v1924_v17 = vld [vmem:[%s1842_s6 + $0x40] sm:$0xff]  ;;  %s1436_s8 = sshll.u32 %s1567_s22, 4  ;;  %s1437_s8 = int_to_ptr.vmem [resolvable:$false] %s1436_s8 }
  0xa8   : > { %v1917_v14 = vld [vmem:[#allocation7 + $0x8] sm:$0xff]  ;;  %v1927_v18 = vld [vmem:[%s1850_s3] sm:$0xff]  ;;  %v1930_v19 = vld [vmem:[%s1850_s3 + $0x18] sm:$0xff]  ;;  %p1434_p10 = pnand %p1433_p2, %p2671_p6  ;;  %s1438_s30 = scalar_lea.vmem %s1437_s8, 8192 }
  0xa9   : > { %v1934_v20 = vmul.f32 %v1900_v8, %v1927_v18  ;;  %v1938_v21 = vmul.f32 %v1902_v9, %v1930_v19  ;;  %v1941_v22 = vld [vmem:[%s1850_s3 + $0x10] sm:$0xff]  ;;  %v1944_v23 = vld [vmem:[%s1850_s3 + $0x28] sm:$0xff]  ;;  %v1947_v24 = vld [vmem:[%s1850_s3 + $0x20] sm:$0xff]  ;;  %p1439_p4 = scmp.lt.s32.totalorder %s2374_s12, %s1437_s8  ;;  %p1440_p9 = scmp.lt.s32.totalorder %s1438_s30, %s1432_s11 }
  0xaa   : > { %v1951_v25 = vmul.f32 %v1904_v10, %v1941_v22  ;;  %v1955_v26 = vmul.f32 %v1906_v11, %v1944_v23  ;;  %v1959_v27 = vmul.f32 %v1908_v12, %v1947_v24  ;;  %v414_v28 = vld [vmem:[%s1850_s3 + $0x38] sm:$0xff]  ;;  %v413_v29 = vld [vmem:[%s1850_s3 + $0x30] sm:$0xff]  ;;  %v416_v30 = vld [vmem:[%s1850_s3 + $0x48] sm:$0xff]  ;;  %p1435_p3 = pneg %p1434_p10 }
  0xab   : > { %497 = vrot.lane.b32.xlu1 %v1885_v4, %s1566_s26  ;;  %495 = vrot.lane.b32.xlu0 %v1888_v5, %s1566_s26  ;;  %v1969_v31 = vmul.f32 %v1919_v15, %v414_v28  ;;  %v1972_v32 = vmul.f32 %v1921_v16, %v413_v29  ;;  %v1975_v33 = vmul.f32 %v1917_v14, %v416_v30  ;;  %v415_v34 = vld [vmem:[%s1850_s3 + $0x40] sm:$0xff]  ;;  %v1979_v35 = vld [vmem:[%s1842_s6 + $0x58] sm:$0xff]  ;;  %p1441_p5 = por %p1440_p9, %p1439_p4 }
  0xac   : > { %v1982_v36 = vld [vmem:[%s1842_s6 + $0x50] sm:$0xff]  ;;  %v1985_v37 = vmul.f32 %v1900_v8, %v415_v34  ;;  %v1992_v38 = vld [vmem:[%s1842_s6 + $0x68] sm:$0xff]  ;;  %v1995_v39 = vld [vmem:[%s1842_s6 + $0x60] sm:$0xff] }
  0xad   : > { %2647 = vst [vmem:[#allocation22_spill] sm:$0xff] %v1975_v33  ;;  %v2002_v40 = vld [vmem:[%s1842_s6 + $0x78] sm:$0xff]  ;;  %v2005_v41 = vld [vmem:[%s1842_s6 + $0x70] sm:$0xff]  ;;  %v2012_v42 = vld [vmem:[%s1842_s6 + $0x88] sm:$0xff]  ;;  %p1442_p7 = pnand %p1441_p5, %p1435_p3 }
  0xae   : > { %2648 = vst [vmem:[#allocation23_spill] sm:$0xff] %v1985_v37  ;;  %v2015_v43 = vld [vmem:[%s1842_s6 + $0x80] sm:$0xff]  ;;  %v2022_v44 = vld [vmem:[%s1842_s6 + $0x98] sm:$0xff]  ;;  %v2025_v45 = vld [vmem:[%s1842_s6 + $0x90] sm:$0xff] }
  0xaf   : > { %501 = vrot.lane.b32.xlu1 %v1895_v6, %s1566_s26  ;;  %499 = vrot.lane.b32.xlu0 %v1898_v7, %s1566_s26  ;;  %v2032_v46 = vld [vmem:[%s1842_s6 + $0xa8] sm:$0xff]  ;;  %v2035_v47 = vld [vmem:[%s1842_s6 + $0xa0] sm:$0xff] }
  0xb0   : > { %v2042_v48 = vld [vmem:[%s1842_s6 + $0xb8] sm:$0xff]  ;;  %v2045_v49 = vld [vmem:[%s1842_s6 + $0xb0] sm:$0xff]  ;;  %v2052_v50 = vld [vmem:[%s1842_s6 + $0xc8] sm:$0xff] }
  0xb1   : > { %v2055_v51 = vld [vmem:[%s1842_s6 + $0xc0] sm:$0xff]  ;;  %v2062_v52 = vld [vmem:[%s1842_s6 + $0xd8] sm:$0xff]  ;;  %v2065_v53 = vld [vmem:[%s1842_s6 + $0xd0] sm:$0xff] }
  0xb2   : > { %v2072_v54 = vld [vmem:[%s1842_s6 + $0xe8] sm:$0xff]  ;;  %v2075_v55 = vld [vmem:[%s1842_s6 + $0xe0] sm:$0xff]  ;;  %v2082_v56 = vld [vmem:[%s1842_s6 + $0xf8] sm:$0xff] }
  0xb3   : > { %505 = vrot.lane.b32.xlu1 %v1915_v13, %s1566_s26  ;;  %503 = vrot.lane.b32.xlu0 %v1924_v17, %s1566_s26  ;;  %v2085_v57 = vld [vmem:[%s1842_s6 + $0xf0] sm:$0xff]  ;;  %v2092_v58 = vld [vmem:[%s1850_s3 + $0x8] sm:$0xff] }
  0xb4   : > { %v2111_v59 = vld [vmem:[%s1850_s3 + $0x58] sm:$0xff]  ;;  %v2114_v60 = vld [vmem:[%s1850_s3 + $0x50] sm:$0xff]  ;;  %v2121_v61 = vld [vmem:[%s1850_s3 + $0x68] sm:$0xff] }
  0xb5   : > { %2649 = vst [vmem:[#allocation24_spill] sm:$0xff] %v2111_v59  ;;  %2650 = vst [vmem:[#allocation25_spill] sm:$0xff] %v2114_v60  ;;  %v2124_v62 = vld [vmem:[%s1850_s3 + $0x60] sm:$0xff]  ;;  %v2131_v63 = vld [vmem:[%s1850_s3 + $0x78] sm:$0xff] }
  0xb6   : > { %2651 = vst [vmem:[#allocation26_spill] sm:$0xff] %v2121_v61  ;;  %2652 = vst [vmem:[#allocation27_spill] sm:$0xff] %v2124_v62  ;;  %v2219_v33 = vld [vmem:[%s1850_s3 + $0xe8] sm:$0xff] }
  0xb7   : > { %509 = vrot.lane.b32.xlu1 %v1979_v35, %s1566_s26  ;;  %507 = vrot.lane.b32.xlu0 %v1982_v36, %s1566_s26  ;;  %2653 = vst [vmem:[#allocation28_spill] sm:$0xff] %v2131_v63  ;;  %2667 = vst [vmem:[#allocation42_spill] sm:$0xff] %v2219_v33 }
  0xbb   : > { %513 = vrot.lane.b32.xlu1 %v1992_v38, %s1566_s26  ;;  %511 = vrot.lane.b32.xlu0 %v1995_v39, %s1566_s26 }
  0xbf   : > { %517 = vrot.lane.b32.xlu1 %v2002_v40, %s1566_s26  ;;  %515 = vrot.lane.b32.xlu0 %v2005_v41, %s1566_s26 }
  0xc3   : > { %521 = vrot.lane.b32.xlu1 %v2012_v42, %s1566_s26  ;;  %519 = vrot.lane.b32.xlu0 %v2015_v43, %s1566_s26 }
  0xc7   : > { %525 = vrot.lane.b32.xlu1 %v2022_v44, %s1566_s26  ;;  %523 = vrot.lane.b32.xlu0 %v2025_v45, %s1566_s26 }
  0xcb   : > { %529 = vrot.lane.b32.xlu1 %v2032_v46, %s1566_s26  ;;  %527 = vrot.lane.b32.xlu0 %v2035_v47, %s1566_s26 }
  0xcf   : > { %533 = vrot.lane.b32.xlu1 %v2042_v48, %s1566_s26  ;;  %531 = vrot.lane.b32.xlu0 %v2045_v49, %s1566_s26 }
  0xd3   : > { %537 = vrot.lane.b32.xlu1 %v2052_v50, %s1566_s26  ;;  %535 = vrot.lane.b32.xlu0 %v2055_v51, %s1566_s26 }
  0xd7   : > { %541 = vrot.lane.b32.xlu1 %v2062_v52, %s1566_s26  ;;  %539 = vrot.lane.b32.xlu0 %v2065_v53, %s1566_s26 }
  0xdb   : > { %545 = vrot.lane.b32.xlu1 %v2072_v54, %s1566_s26  ;;  %543 = vrot.lane.b32.xlu0 %v2075_v55, %s1566_s26 }
  0xdf   : > { %549 = vrot.lane.b32.xlu1 %v2082_v56, %s1566_s26  ;;  %547 = vrot.lane.b32.xlu0 %v2085_v57, %s1566_s26 }
  0xe3   : > { %617 = vrot.lane.b32.xlu1 %v2092_v58, %s1566_s26  ;;  %615 = vrot.lane.b32.xlu0 %v1927_v18, %s1566_s26  ;;  %v2134_v18 = vld [vmem:[%s1850_s3 + $0x70] sm:$0xff] }
  0xe4   : > { %2654 = vst [vmem:[#allocation29_spill] sm:$0xff] %v2134_v18 }
  0xe7   : > { %621 = vrot.lane.b32.xlu1 %v1930_v19, %s1566_s26  ;;  %619 = vrot.lane.b32.xlu0 %v1941_v22, %s1566_s26  ;;  %v2141_v19 = vld [vmem:[%s1850_s3 + $0x88] sm:$0xff]  ;;  %v2144_v22 = vld [vmem:[%s1850_s3 + $0x80] sm:$0xff] }
  0xe8   : > { %2655 = vst [vmem:[#allocation30_spill] sm:$0xff] %v2141_v19  ;;  %2656 = vst [vmem:[#allocation31_spill] sm:$0xff] %v2144_v22 }
  0xeb   : > { %625 = vrot.lane.b32.xlu1 %v1944_v23, %s1566_s26  ;;  %623 = vrot.lane.b32.xlu0 %v1947_v24, %s1566_s26  ;;  %v2151_v23 = vld [vmem:[%s1850_s3 + $0x98] sm:$0xff]  ;;  %v2154_v24 = vld [vmem:[%s1850_s3 + $0x90] sm:$0xff] }
  0xec   : > { %2657 = vst [vmem:[#allocation32_spill] sm:$0xff] %v2151_v23  ;;  %2658 = vst [vmem:[#allocation33_spill] sm:$0xff] %v2154_v24 }
  0xef   : > { %629 = vrot.lane.b32.xlu1 %v414_v28, %s1566_s26  ;;  %627 = vrot.lane.b32.xlu0 %v413_v29, %s1566_s26  ;;  %v2161_v28 = vld [vmem:[%s1850_s3 + $0xa8] sm:$0xff]  ;;  %v2164_v29 = vld [vmem:[%s1850_s3 + $0xa0] sm:$0xff] }
  0xf0   : > { %2659 = vst [vmem:[#allocation34_spill] sm:$0xff] %v2161_v28  ;;  %2660 = vst [vmem:[#allocation35_spill] sm:$0xff] %v2164_v29 }
  0xf3   : > { %633 = vrot.lane.b32.xlu1 %v416_v30, %s1566_s26  ;;  %631 = vrot.lane.b32.xlu0 %v415_v34, %s1566_s26  ;;  %v2171_v30 = vld [vmem:[%s1850_s3 + $0xb8] sm:$0xff]  ;;  %v2174_v34 = vld [vmem:[%s1850_s3 + $0xb0] sm:$0xff] }
  0xf4   : > { %2661 = vst [vmem:[#allocation36_spill] sm:$0xff] %v2171_v30  ;;  %2662 = vst [vmem:[#allocation37_spill] sm:$0xff] %v2174_v34 }
  0xf7   : > { %637 = vrot.lane.b32.xlu1 %v2111_v59, %s1566_s26  ;;  %635 = vrot.lane.b32.xlu0 %v2114_v60, %s1566_s26 }
  0xfb   : > { %641 = vrot.lane.b32.xlu1 %v2121_v61, %s1566_s26  ;;  %639 = vrot.lane.b32.xlu0 %v2124_v62, %s1566_s26  ;;  %v714_v62 = vmul.f32 %v1902_v9, %v1875_v2  ;;  %v712_v61 = vmul.f32 %v1917_v14, %v1878_v3 }
  0xff   : > { %645 = vrot.lane.b32.xlu1 %v2131_v63, %s1566_s26  ;;  %643 = vrot.lane.b32.xlu0 %v2134_v18, %s1566_s26 }
 0x103   : > { %649 = vrot.lane.b32.xlu1 %v2141_v19, %s1566_s26  ;;  %647 = vrot.lane.b32.xlu0 %v2144_v22, %s1566_s26  ;;  %v2199_v22 = vld [vmem:[%s1850_s3 + $0xd8] sm:$0xff]  ;;  %v2202_v19 = vld [vmem:[%s1850_s3 + $0xd0] sm:$0xff] }
 0x104   : > { %2665 = vst [vmem:[#allocation40_spill] sm:$0xff] %v2199_v22  ;;  %2666 = vst [vmem:[#allocation41_spill] sm:$0xff] %v2202_v19 }
 0x107   : > { %653 = vrot.lane.b32.xlu1 %v2151_v23, %s1566_s26  ;;  %651 = vrot.lane.b32.xlu0 %v2154_v24, %s1566_s26  ;;  %v2181_v24 = vld [vmem:[%s1850_s3 + $0xc8] sm:$0xff]  ;;  %v2184_v23 = vld [vmem:[%s1850_s3 + $0xc0] sm:$0xff] }
 0x108   : > { %2663 = vst [vmem:[#allocation38_spill] sm:$0xff] %v2181_v24  ;;  %2664 = vst [vmem:[#allocation39_spill] sm:$0xff] %v2184_v23 }
 0x10b   : > { %657 = vrot.lane.b32.xlu1 %v2161_v28, %s1566_s26  ;;  %655 = vrot.lane.b32.xlu0 %v2164_v29, %s1566_s26  ;;  %v2190_v29 = vld [vmem:[#allocation8 + $0x10] sm:$0xff]  ;;  %v2192_v28 = vld [vmem:[#allocation8] sm:$0xff] }
 0x10f   : > { %661 = vrot.lane.b32.xlu1 %v2171_v30, %s1566_s26  ;;  %659 = vrot.lane.b32.xlu0 %v2174_v34, %s1566_s26  ;;  %v713_v30 = vmul.f32 %v1904_v10, %v1865_v0  ;;  %v711_v34 = vmul.f32 %v1900_v8, %v1868_v1  ;;  %v2210_v0 = vld [vmem:[#allocation8 + $0x18] sm:$0xff]  ;;  %v2212_v1 = vld [vmem:[#allocation8 + $0x8] sm:$0xff] }
 0x113   : > { %665 = vrot.lane.b32.xlu1 %v2181_v24, %s1566_s26  ;;  %663 = vrot.lane.b32.xlu0 %v2184_v23, %s1566_s26 }
 0x115   : > { %v492_v24 = vpop.permute.xlu1 %491  ;;  %v488_v18 = vpop.permute.xlu0 %487 }
 0x116   : > { %v745_v23 = vmul.f32 %v492_v24, %v2190_v29  ;;  %v743_v63 = vmul.f32 %v488_v18, %v2192_v28  ;;  %v2222_v18 = vld [vmem:[%s1850_s3 + $0xe0] sm:$0xff] }
 0x117   : > { %669 = vrot.lane.b32.xlu1 %v2199_v22, %s1566_s26  ;;  %667 = vrot.lane.b32.xlu0 %v2202_v19, %s1566_s26  ;;  %2668 = vst [vmem:[#allocation43_spill] sm:$0xff] %v2222_v18 }
 0x118   : > { %v777_v37 = vadd.f32 %v745_v23, %v713_v30  ;;  %v775_v24 = vadd.f32 %v743_v63, %v711_v34  ;;  %v2235_v63 = vld [vmem:[#allocation8 + $0x28] sm:$0xff]  ;;  %v2237_v23 = vld [vmem:[#allocation8 + $0x20] sm:$0xff]  ;;  %v715_v30 = vmul.f32 %v1908_v12, %v1888_v5  ;;  %v2259_v5 = vld [vmem:[#allocation8 + $0x30] sm:$0xff] }
 0x119   : > { %v494_v22 = vpop.permute.xlu1 %493  ;;  %v490_v19 = vpop.permute.xlu0 %489 }
 0x11a   : > { %809 = vst [vmem:[%s2225_s24 + $0x10] sm:$0xff] %v777_v37  ;;  %807 = vst [vmem:[%s2225_s24] sm:$0xff] %v775_v24  ;;  %v746_v2 = vmul.f32 %v494_v22, %v2210_v0  ;;  %v744_v3 = vmul.f32 %v490_v19, %v2212_v1  ;;  %v716_v37 = vmul.f32 %v1906_v11, %v1885_v4  ;;  %v2244_v24 = vld [vmem:[%s1850_s3 + $0xf8] sm:$0xff]  ;;  %v2247_v19 = vld [vmem:[%s1850_s3 + $0xf0] sm:$0xff] }
 0x11b   : > { %673 = vrot.lane.b32.xlu1 %v2219_v33, %s1566_s26  ;;  %671 = vrot.lane.b32.xlu0 %v2222_v18, %s1566_s26  ;;  %2669 = vst [vmem:[#allocation44_spill] sm:$0xff] %v2244_v24  ;;  %2670 = vst [vmem:[#allocation45_spill] sm:$0xff] %v2247_v19  ;;  %v2257_v4 = vld [vmem:[#allocation8 + $0x38] sm:$0xff] }
 0x11c   : > { %v778_v34 = vadd.f32 %v746_v2, %v714_v62  ;;  %v776_v22 = vadd.f32 %v744_v3, %v712_v61  ;;  %v718_v61 = vmul.f32 %v1919_v15, %v1895_v6  ;;  %v717_v62 = vmul.f32 %v1921_v16, %v1898_v7 }
 0x11d   : > { %v498_v33 = vpop.permute.xlu1 %497  ;;  %v496_v60 = vpop.permute.xlu0 %495  ;;  %v719_v6 = vmul.f32 %v1900_v8, %v1924_v17 }
 0x11e   : > { %810 = vst [vmem:[%s2225_s24 + $0x18] sm:$0xff] %v778_v34  ;;  %808 = vst [vmem:[%s2225_s24 + $0x8] sm:$0xff] %v776_v22  ;;  %v748_v18 = vmul.f32 %v498_v33, %v2235_v63  ;;  %v747_v59 = vmul.f32 %v496_v60, %v2237_v23 }
 0x11f   : > { %677 = vrot.lane.b32.xlu1 %v2244_v24, %s1566_s26  ;;  %675 = vrot.lane.b32.xlu0 %v2247_v19, %s1566_s26  ;;  %v720_v19 = vmul.f32 %v1917_v14, %v1915_v13  ;;  %v721_v13 = vmul.f32 %v1904_v10, %v1982_v36 }
 0x120   : > { %v780_v33 = vadd.f32 %v748_v18, %v716_v37  ;;  %v779_v60 = vadd.f32 %v747_v59, %v715_v30 }
 0x121   : > { %v502_v2 = vpop.permute.xlu1 %501  ;;  %v500_v3 = vpop.permute.xlu0 %499 }
 0x122   : > { %812 = vst [vmem:[%s2225_s24 + $0x28] sm:$0xff] %v780_v33  ;;  %811 = vst [vmem:[%s2225_s24 + $0x20] sm:$0xff] %v779_v60  ;;  %v750_v34 = vmul.f32 %v502_v2, %v2257_v4  ;;  %v749_v22 = vmul.f32 %v500_v3, %v2259_v5  ;;  %v722_v33 = vmul.f32 %v1902_v9, %v1979_v35 }
 0x123   : > { %v724_v3 = vmul.f32 %v1906_v11, %v1992_v38  ;;  %v723_v35 = vmul.f32 %v1908_v12, %v1995_v39  ;;  %v725_v38 = vmul.f32 %v1921_v16, %v2005_v41 }
 0x124   : > { %v782_v7 = vadd.f32 %v750_v34, %v718_v61  ;;  %v781_v24 = vadd.f32 %v749_v22, %v717_v62 }
 0x125   : > { %v506_v18 = vpop.permute.xlu1 %505  ;;  %v504_v59 = vpop.permute.xlu0 %503 }
 0x126   : > { %814 = vst [vmem:[%s2225_s24 + $0x38] sm:$0xff] %v782_v7  ;;  %813 = vst [vmem:[%s2225_s24 + $0x30] sm:$0xff] %v781_v24  ;;  %v752_v37 = vmul.f32 %v506_v18, %v2212_v1  ;;  %v751_v30 = vmul.f32 %v504_v59, %v2192_v28  ;;  %v726_v18 = vmul.f32 %v1919_v15, %v2002_v40 }
 0x127   : > { %v727_v40 = vmul.f32 %v1900_v8, %v2015_v43 }
 0x128   : > { %v784_v17 = vadd.f32 %v752_v37, %v720_v19  ;;  %v783_v60 = vadd.f32 %v751_v30, %v719_v6 }
 0x129   : > { %v510_v61 = vpop.permute.xlu1 %509  ;;  %v508_v62 = vpop.permute.xlu0 %507 }
 0x12a   : > { %816 = vst [vmem:[%s2225_s24 + $0x48] sm:$0xff] %v784_v17  ;;  %815 = vst [vmem:[%s2225_s24 + $0x40] sm:$0xff] %v783_v60  ;;  %v754_v24 = vmul.f32 %v510_v61, %v2210_v0  ;;  %v753_v2 = vmul.f32 %v508_v62, %v2190_v29  ;;  %v728_v17 = vmul.f32 %v1917_v14, %v2012_v42 }
 0x12b   : > { %v729_v42 = vmul.f32 %v1904_v10, %v2025_v45 }
 0x12c   : > { %v786_v36 = vadd.f32 %v754_v24, %v722_v33  ;;  %v785_v34 = vadd.f32 %v753_v2, %v721_v13 }
 0x12d   : > { %v514_v19 = vpop.permute.xlu1 %513  ;;  %v512_v22 = vpop.permute.xlu0 %511 }
 0x12e   : > { %818 = vst [vmem:[%s2225_s24 + $0x58] sm:$0xff] %v786_v36  ;;  %817 = vst [vmem:[%s2225_s24 + $0x50] sm:$0xff] %v785_v34  ;;  %v756_v6 = vmul.f32 %v514_v19, %v2235_v63  ;;  %v755_v7 = vmul.f32 %v512_v22, %v2237_v23 }
 0x130   : > { %v788_v39 = vadd.f32 %v756_v6, %v724_v3  ;;  %v787_v59 = vadd.f32 %v755_v7, %v723_v35  ;;  %v730_v3 = vmul.f32 %v1902_v9, %v2022_v44  ;;  %v732_v6 = vmul.f32 %v1906_v11, %v2032_v46 }
 0x131   : > { %v518_v37 = vpop.permute.xlu1 %517  ;;  %v516_v30 = vpop.permute.xlu0 %515  ;;  %v731_v44 = vmul.f32 %v1908_v12, %v2035_v47  ;;  %v733_v46 = vmul.f32 %v1921_v16, %v2045_v49 }
 0x132   : > { %820 = vst [vmem:[%s2225_s24 + $0x68] sm:$0xff] %v788_v39  ;;  %819 = vst [vmem:[%s2225_s24 + $0x60] sm:$0xff] %v787_v59  ;;  %v758_v33 = vmul.f32 %v518_v37, %v2257_v4  ;;  %v757_v13 = vmul.f32 %v516_v30, %v2259_v5  ;;  %v734_v37 = vmul.f32 %v1919_v15, %v2042_v48 }
 0x133   : > { %v735_v48 = vmul.f32 %v1900_v8, %v2055_v51 }
 0x134   : > { %v790_v41 = vadd.f32 %v758_v33, %v726_v18  ;;  %v789_v60 = vadd.f32 %v757_v13, %v725_v38 }
 0x135   : > { %v522_v61 = vpop.permute.xlu1 %521  ;;  %v520_v62 = vpop.permute.xlu0 %519 }
 0x136   : > { %822 = vst [vmem:[%s2225_s24 + $0x78] sm:$0xff] %v790_v41  ;;  %821 = vst [vmem:[%s2225_s24 + $0x70] sm:$0xff] %v789_v60  ;;  %v760_v24 = vmul.f32 %v522_v61, %v2212_v1  ;;  %v759_v2 = vmul.f32 %v520_v62, %v2192_v28  ;;  %v736_v41 = vmul.f32 %v1917_v14, %v2052_v50 }
 0x137   : > { %v737_v50 = vmul.f32 %v1904_v10, %v2065_v53 }
 0x138   : > { %v792_v43 = vadd.f32 %v760_v24, %v728_v17  ;;  %v791_v35 = vadd.f32 %v759_v2, %v727_v40 }
 0x139   : > { %v526_v36 = vpop.permute.xlu1 %525  ;;  %v524_v34 = vpop.permute.xlu0 %523 }
 0x13a   : > { %824 = vst [vmem:[%s2225_s24 + $0x88] sm:$0xff] %v792_v43  ;;  %823 = vst [vmem:[%s2225_s24 + $0x80] sm:$0xff] %v791_v35  ;;  %v762_v19 = vmul.f32 %v526_v36, %v2210_v0  ;;  %v761_v22 = vmul.f32 %v524_v34, %v2190_v29 }
 0x13c   : > { %v794_v45 = vadd.f32 %v762_v19, %v730_v3  ;;  %v793_v7 = vadd.f32 %v761_v22, %v729_v42  ;;  %v738_v3 = vmul.f32 %v1902_v9, %v2062_v52  ;;  %v740_v52 = vmul.f32 %v1906_v11, %v2072_v54 }
 0x13d   : > { %v530_v18 = vpop.permute.xlu1 %529  ;;  %v528_v38 = vpop.permute.xlu0 %527  ;;  %v739_v19 = vmul.f32 %v1908_v12, %v2075_v55  ;;  %v741_v54 = vmul.f32 %v1921_v16, %v2085_v57 }
 0x13e   : > { %826 = vst [vmem:[%s2225_s24 + $0x98] sm:$0xff] %v794_v45  ;;  %825 = vst [vmem:[%s2225_s24 + $0x90] sm:$0xff] %v793_v7  ;;  %v764_v39 = vmul.f32 %v530_v18, %v2235_v63  ;;  %v763_v59 = vmul.f32 %v528_v38, %v2237_v23  ;;  %v742_v18 = vmul.f32 %v1919_v15, %v2082_v56 }
 0x13f   : > { %v840_v56 = vmul.f32 %v1917_v14, %v2092_v58 }
 0x140   : > { %v796_v47 = vadd.f32 %v764_v39, %v732_v6  ;;  %v795_v30 = vadd.f32 %v763_v59, %v731_v44 }
 0x141   : > { %v534_v33 = vpop.permute.xlu1 %533  ;;  %v532_v13 = vpop.permute.xlu0 %531 }
 0x142   : > { %828 = vst [vmem:[%s2225_s24 + $0xa8] sm:$0xff] %v796_v47  ;;  %827 = vst [vmem:[%s2225_s24 + $0xa0] sm:$0xff] %v795_v30  ;;  %v766_v17 = vmul.f32 %v534_v33, %v2257_v4  ;;  %v765_v40 = vmul.f32 %v532_v13, %v2259_v5 }
 0x144   : > { %v798_v49 = vadd.f32 %v766_v17, %v734_v37  ;;  %v797_v60 = vadd.f32 %v765_v40, %v733_v46 }
 0x145   : > { %v538_v61 = vpop.permute.xlu1 %537  ;;  %v536_v62 = vpop.permute.xlu0 %535 }
 0x146   : > { %830 = vst [vmem:[%s2225_s24 + $0xb8] sm:$0xff] %v798_v49  ;;  %829 = vst [vmem:[%s2225_s24 + $0xb0] sm:$0xff] %v797_v60  ;;  %v768_v24 = vmul.f32 %v538_v61, %v2212_v1  ;;  %v767_v2 = vmul.f32 %v536_v62, %v2192_v28 }
 0x148   : > { %v800_v51 = vadd.f32 %v768_v24, %v736_v41  ;;  %v799_v42 = vadd.f32 %v767_v2, %v735_v48 }
 0x149   : > { %v542_v43 = vpop.permute.xlu1 %541  ;;  %v540_v35 = vpop.permute.xlu0 %539 }
 0x14a   : > { %832 = vst [vmem:[%s2225_s24 + $0xc8] sm:$0xff] %v800_v51  ;;  %831 = vst [vmem:[%s2225_s24 + $0xc0] sm:$0xff] %v799_v42  ;;  %v770_v36 = vmul.f32 %v542_v43, %v2210_v0  ;;  %v769_v34 = vmul.f32 %v540_v35, %v2190_v29 }
 0x14c   : > { %v802_v53 = vadd.f32 %v770_v36, %v738_v3  ;;  %v801_v22 = vadd.f32 %v769_v34, %v737_v50 }
 0x14d   : > { %v546_v6 = vpop.permute.xlu1 %545  ;;  %v544_v44 = vpop.permute.xlu0 %543 }
 0x14e   : > { %834 = vst [vmem:[%s2225_s24 + $0xd8] sm:$0xff] %v802_v53  ;;  %833 = vst [vmem:[%s2225_s24 + $0xd0] sm:$0xff] %v801_v22  ;;  %v772_v45 = vmul.f32 %v546_v6, %v2235_v63  ;;  %v771_v7 = vmul.f32 %v544_v44, %v2237_v23 }
 0x150   : > { %v804_v55 = vadd.f32 %v772_v45, %v740_v52  ;;  %v803_v38 = vadd.f32 %v771_v7, %v739_v19 }
 0x151   : > { %v550_v39 = vpop.permute.xlu1 %549  ;;  %v548_v59 = vpop.permute.xlu0 %547 }
 0x152   : > { %836 = vst [vmem:[%s2225_s24 + $0xe8] sm:$0xff] %v804_v55  ;;  %835 = vst [vmem:[%s2225_s24 + $0xe0] sm:$0xff] %v803_v38  ;;  %v774_v37 = vmul.f32 %v550_v39, %v2257_v4  ;;  %v773_v46 = vmul.f32 %v548_v59, %v2259_v5 }
 0x154   : > { %v806_v57 = vadd.f32 %v774_v37, %v742_v18  ;;  %v805_v47 = vadd.f32 %v773_v46, %v741_v54 }
 0x155   : > { %v618_v30 = vpop.permute.xlu1 %617  ;;  %v616_v33 = vpop.permute.xlu0 %615 }
 0x156   : > { %838 = vst [vmem:[%s2225_s24 + $0xf8] sm:$0xff] %v806_v57  ;;  %837 = vst [vmem:[%s2225_s24 + $0xf0] sm:$0xff] %v805_v47  ;;  %v872_v13 = vmul.f32 %v618_v30, %v2212_v1  ;;  %v871_v17 = vmul.f32 %v616_v33, %v2192_v28 }
 0x157   : > { %1445 = shalt.err (!%p1442_p7)
}
 0x158   : > { %s1446_s29 = scalar_lea.hbm %s2372_s17, 4096  ;;  %s1450_s6 = scalar_lea.hbm %s2591_s4, 8192 }
 0x159   : > { %p1447_p12 = scmp.ne.s32.totalorder %s2372_s17, %s1446_s29  ;;  %p1451_p11 = scmp.lt.u32.totalorder %s2372_s17, %s2591_s4 }
 0x15a   : > { %p1452_p13 = scmp.lt.u32.totalorder %s1450_s6, %s1446_s29  ;;  %p1454_p2 = scmp.lt.u32.totalorder %s1446_s29, %s2372_s17 }
 0x15b   : > { %p1448_p1 = pnand %p1447_p12, %p2671_p6 }
 0x15c   : > { %p1453_p0 = por %p1452_p13, %p1451_p11 }
 0x15d   : > { %p1449_p8 = pneg %p1448_p1 }
 0x15e   : > { %p1455_p10 = por %p1454_p2, %p1453_p0 }
 0x160   : > { %p1456_p3 = pnand %p1455_p10, %p1449_p8 }
 0x162   : > { %1459 = shalt.err (!%p1456_p3)
}
 0x163   : > { %s1568_s3 = smov 128   ;;  %s1569_s26 = smov 8   ;;  %v904_v58 = vadd.f32 %v872_v13, %v840_v56  ;;  %v903_v40 = vadd.f32 %v871_v17, %v1934_v20  ;;  %v622_v41 = vpop.permute.xlu1 %621  ;;  %v620_v48 = vpop.permute.xlu0 %619  ;;  %v2672_v19 = vld [vmem:[#allocation24_spill] sm:$0xff]  ;;  %v2673_v22 = vld [vmem:[#allocation25_spill] sm:$0xff]  ;;  %v2674_v44 = vld [vmem:[#allocation22_spill] sm:$0xff] }
 0x164   : > { %1230 = dma.vmem_to_hbm [thread:$0]  (%p2671_p6), %s2374_s12, 4096, %s2372_s17, %s968_s2, %s1568_s3, %s1568_s3, %s1569_s26   ;;  %v874_v49 = vmul.f32 %v622_v41, %v2210_v0  ;;  %v873_v60 = vmul.f32 %v620_v48, %v2190_v29  ;;  %v850_v53 = vmul.f32 %v1902_v9, %v2672_v19  ;;  %v849_v6 = vmul.f32 %v1904_v10, %v2673_v22  ;;  %v2675_v45 = vld [vmem:[#allocation23_spill] sm:$0xff]  ;;  %v2676_v38 = vld [vmem:[#allocation26_spill] sm:$0xff]  ;;  %v2678_v13 = vld [vmem:[#allocation28_spill] sm:$0xff] }
 0x165   : > { %s2411_s24 = scalar_lea.vmem [#allocation11], %s1838_s15  ;;  %v852_v39 = vmul.f32 %v1906_v11, %v2676_v38  ;;  %v2677_v59 = vld [vmem:[#allocation27_spill] sm:$0xff]  ;;  %v854_v17 = vmul.f32 %v1919_v15, %v2678_v13  ;;  %s2531_s16 = scalar_lea.hbm %s2592_s5, %s1215_s25 }
 0x166   : > { %936 = vst [vmem:[%s2411_s24 + $0x8] sm:$0xff] %v904_v58  ;;  %935 = vst [vmem:[%s2411_s24] sm:$0xff] %v903_v40  ;;  %v906_v61 = vadd.f32 %v874_v49, %v1938_v21  ;;  %v905_v20 = vadd.f32 %v873_v60, %v1951_v25  ;;  %v851_v37 = vmul.f32 %v1908_v12, %v2677_v59  ;;  %v2679_v58 = vld [vmem:[#allocation29_spill] sm:$0xff]  ;;  %v2686_v59 = vld [vmem:[#allocation36_spill] sm:$0xff]  ;;  %s1008_s15 = sshll.u32 %s2411_s24, 4  ;;  %s973_s17 = scalar_lea.sflag [#allocation12], %s1835_s13  ;;  %s2533_s15 = int_to_ptr.vmem [resolvable:$true] %s1008_s15 }
 0x167   : > { %v626_v62 = vpop.permute.xlu1 %625  ;;  %v624_v24 = vpop.permute.xlu0 %623  ;;  %v853_v40 = vmul.f32 %v1921_v16, %v2679_v58  ;;  %v2688_v58 = vld [vmem:[#allocation38_spill] sm:$0xff]  ;;  %s1460_s2 = scalar_lea.vmem %s2533_s15, 4096  ;;  %s1570_s11 = smov [#allocation11]  }
 0x168   : > { %938 = vst [vmem:[%s2411_s24 + $0x18] sm:$0xff] %v906_v61  ;;  %937 = vst [vmem:[%s2411_s24 + $0x10] sm:$0xff] %v905_v20  ;;  %v876_v2 = vmul.f32 %v626_v62, %v2235_v63  ;;  %v875_v3 = vmul.f32 %v624_v24, %v2237_v23  ;;  %v2680_v62 = vld [vmem:[#allocation30_spill] sm:$0xff]  ;;  %p1461_p4 = scmp.ne.s32.totalorder %s2533_s15, %s1460_s2  ;;  %s1464_s21 = sshll.u32 %s1570_s11, 4  ;;  %s1465_s21 = int_to_ptr.vmem [resolvable:$false] %s1464_s21 }
 0x169   : > { %v856_v24 = vmul.f32 %v1917_v14, %v2680_v62  ;;  %s1466_s22 = scalar_lea.vmem %s1465_s21, 8192  ;;  %p1467_p7 = scmp.lt.s32.totalorder %s2533_s15, %s1465_s21 }
 0x16a   : > { %v908_v50 = vadd.f32 %v876_v2, %v1955_v26  ;;  %v907_v51 = vadd.f32 %v875_v3, %v1959_v27  ;;  %v2681_v2 = vld [vmem:[#allocation31_spill] sm:$0xff]  ;;  %p1462_p9 = pnand %p1461_p4, %p2671_p6  ;;  %p1468_p12 = scmp.lt.s32.totalorder %s1466_s22, %s1460_s2 }
 0x16b   : > { %v630_v42 = vpop.permute.xlu1 %629  ;;  %v628_v43 = vpop.permute.xlu0 %627  ;;  %v855_v3 = vmul.f32 %v1900_v8, %v2681_v2  ;;  %v2690_v2 = vld [vmem:[#allocation40_spill] sm:$0xff] }
 0x16c   : > { %940 = vst [vmem:[%s2411_s24 + $0x28] sm:$0xff] %v908_v50  ;;  %939 = vst [vmem:[%s2411_s24 + $0x20] sm:$0xff] %v907_v51  ;;  %v878_v21 = vmul.f32 %v630_v42, %v2257_v4  ;;  %v877_v25 = vmul.f32 %v628_v43, %v2259_v5  ;;  %p1463_p5 = pneg %p1462_p9  ;;  %p1469_p1 = por %p1468_p12, %p1467_p7 }
 0x16e   : > { %v910_v35 = vadd.f32 %v878_v21, %v1969_v31  ;;  %v909_v36 = vadd.f32 %v877_v25, %v1972_v32  ;;  %p1470_p8 = pnand %p1469_p1, %p1463_p5 }
 0x16f   : > { %v634_v34 = vpop.permute.xlu1 %633  ;;  %v632_v52 = vpop.permute.xlu0 %631 }
 0x170   : > { %942 = vst [vmem:[%s2411_s24 + $0x38] sm:$0xff] %v910_v35  ;;  %941 = vst [vmem:[%s2411_s24 + $0x30] sm:$0xff] %v909_v36  ;;  %v880_v26 = vmul.f32 %v634_v34, %v2212_v1  ;;  %v879_v27 = vmul.f32 %v632_v52, %v2192_v28  ;;  %v2682_v35 = vld [vmem:[#allocation32_spill] sm:$0xff]  ;;  %v2683_v34 = vld [vmem:[#allocation33_spill] sm:$0xff] }
 0x171   : > { %v858_v36 = vmul.f32 %v1902_v9, %v2682_v35  ;;  %v857_v52 = vmul.f32 %v1904_v10, %v2683_v34  ;;  %v2693_v35 = vld [vmem:[#allocation43_spill] sm:$0xff] }
 0x172   : > { %v912_v31 = vadd.f32 %v880_v26, %v2674_v44  ;;  %v911_v32 = vadd.f32 %v879_v27, %v2675_v45  ;;  %v2684_v44 = vld [vmem:[#allocation34_spill] sm:$0xff]  ;;  %v2685_v45 = vld [vmem:[#allocation35_spill] sm:$0xff] }
 0x173   : > { %v638_v7 = vpop.permute.xlu1 %637  ;;  %v636_v18 = vpop.permute.xlu0 %635 }
 0x174   : > { %944 = vst [vmem:[%s2411_s24 + $0x48] sm:$0xff] %v912_v31  ;;  %943 = vst [vmem:[%s2411_s24 + $0x40] sm:$0xff] %v911_v32  ;;  %v882_v54 = vmul.f32 %v638_v7, %v2210_v0  ;;  %v881_v55 = vmul.f32 %v636_v18, %v2190_v29  ;;  %v860_v31 = vmul.f32 %v1906_v11, %v2684_v44 }
 0x175   : > { %v859_v32 = vmul.f32 %v1908_v12, %v2685_v45 }
 0x176   : > { %v914_v46 = vadd.f32 %v882_v54, %v850_v53  ;;  %v913_v56 = vadd.f32 %v881_v55, %v849_v6 }
 0x177   : > { %v642_v57 = vpop.permute.xlu1 %641  ;;  %v640_v47 = vpop.permute.xlu0 %639 }
 0x178   : > { %946 = vst [vmem:[%s2411_s24 + $0x58] sm:$0xff] %v914_v46  ;;  %945 = vst [vmem:[%s2411_s24 + $0x50] sm:$0xff] %v913_v56  ;;  %v884_v30 = vmul.f32 %v642_v57, %v2235_v63  ;;  %v883_v33 = vmul.f32 %v640_v47, %v2237_v23  ;;  %v2687_v46 = vld [vmem:[#allocation37_spill] sm:$0xff] }
 0x179   : > { %v861_v56 = vmul.f32 %v1921_v16, %v2687_v46 }
 0x17a   : > { %v916_v41 = vadd.f32 %v884_v30, %v852_v39  ;;  %v915_v48 = vadd.f32 %v883_v33, %v851_v37  ;;  %v862_v37 = vmul.f32 %v1919_v15, %v2686_v59 }
 0x17b   : > { %v646_v49 = vpop.permute.xlu1 %645  ;;  %v644_v60 = vpop.permute.xlu0 %643 }
 0x17c   : > { %948 = vst [vmem:[%s2411_s24 + $0x68] sm:$0xff] %v916_v41  ;;  %947 = vst [vmem:[%s2411_s24 + $0x60] sm:$0xff] %v915_v48  ;;  %v886_v61 = vmul.f32 %v646_v49, %v2257_v4  ;;  %v885_v20 = vmul.f32 %v644_v60, %v2259_v5  ;;  %v2689_v41 = vld [vmem:[#allocation39_spill] sm:$0xff] }
 0x17d   : > { %v863_v48 = vmul.f32 %v1900_v8, %v2689_v41 }
 0x17e   : > { %v918_v50 = vadd.f32 %v886_v61, %v854_v17  ;;  %v917_v51 = vadd.f32 %v885_v20, %v853_v40  ;;  %v864_v40 = vmul.f32 %v1917_v14, %v2688_v58 }
 0x17f   : > { %v650_v42 = vpop.permute.xlu1 %649  ;;  %v648_v43 = vpop.permute.xlu0 %647 }
 0x180   : > { %950 = vst [vmem:[%s2411_s24 + $0x78] sm:$0xff] %v918_v50  ;;  %949 = vst [vmem:[%s2411_s24 + $0x70] sm:$0xff] %v917_v51  ;;  %v888_v21 = vmul.f32 %v650_v42, %v2212_v1  ;;  %v887_v25 = vmul.f32 %v648_v43, %v2192_v28  ;;  %v2691_v50 = vld [vmem:[#allocation41_spill] sm:$0xff] }
 0x181   : > { %v865_v14 = vmul.f32 %v1904_v10, %v2691_v50 }
 0x182   : > { %v920_v26 = vadd.f32 %v888_v21, %v856_v24  ;;  %v919_v27 = vadd.f32 %v887_v25, %v855_v3  ;;  %v866_v3 = vmul.f32 %v1902_v9, %v2690_v2  ;;  %v2692_v25 = vld [vmem:[#allocation42_spill] sm:$0xff]  ;;  %v867_v9 = vmul.f32 %v1908_v12, %v2693_v35 }
 0x183   : > { %v654_v19 = vpop.permute.xlu1 %653  ;;  %v652_v53 = vpop.permute.xlu0 %651 }
 0x184   : > { %952 = vst [vmem:[%s2411_s24 + $0x88] sm:$0xff] %v920_v26  ;;  %951 = vst [vmem:[%s2411_s24 + $0x80] sm:$0xff] %v919_v27  ;;  %v890_v22 = vmul.f32 %v654_v19, %v2210_v0  ;;  %v889_v6 = vmul.f32 %v652_v53, %v2190_v29  ;;  %v2694_v26 = vld [vmem:[#allocation44_spill] sm:$0xff]  ;;  %v2695_v27 = vld [vmem:[#allocation45_spill] sm:$0xff] }
 0x185   : > { %v869_v12 = vmul.f32 %v1921_v16, %v2695_v27 }
 0x186   : > { %v922_v7 = vadd.f32 %v890_v22, %v858_v36  ;;  %v921_v18 = vadd.f32 %v889_v6, %v857_v52 }
 0x187   : > { %v658_v54 = vpop.permute.xlu1 %657  ;;  %v656_v55 = vpop.permute.xlu0 %655 }
 0x188   : > { %954 = vst [vmem:[%s2411_s24 + $0x98] sm:$0xff] %v922_v7  ;;  %953 = vst [vmem:[%s2411_s24 + $0x90] sm:$0xff] %v921_v18  ;;  %v892_v38 = vmul.f32 %v658_v54, %v2235_v63  ;;  %v891_v39 = vmul.f32 %v656_v55, %v2237_v23 }
 0x18a   : > { %v924_v57 = vadd.f32 %v892_v38, %v860_v31  ;;  %v923_v47 = vadd.f32 %v891_v39, %v859_v32 }
 0x18b   : > { %v662_v30 = vpop.permute.xlu1 %661  ;;  %v660_v33 = vpop.permute.xlu0 %659 }
 0x18c   : > { %956 = vst [vmem:[%s2411_s24 + $0xa8] sm:$0xff] %v924_v57  ;;  %955 = vst [vmem:[%s2411_s24 + $0xa0] sm:$0xff] %v923_v47  ;;  %v894_v13 = vmul.f32 %v662_v30, %v2257_v4  ;;  %v893_v17 = vmul.f32 %v660_v33, %v2259_v5 }
 0x18e   : > { %v926_v49 = vadd.f32 %v894_v13, %v862_v37  ;;  %v925_v60 = vadd.f32 %v893_v17, %v861_v56 }
 0x18f   : > { %v666_v61 = vpop.permute.xlu1 %665  ;;  %v664_v20 = vpop.permute.xlu0 %663 }
 0x190   : > { %958 = vst [vmem:[%s2411_s24 + $0xb8] sm:$0xff] %v926_v49  ;;  %957 = vst [vmem:[%s2411_s24 + $0xb0] sm:$0xff] %v925_v60  ;;  %v896_v62 = vmul.f32 %v666_v61, %v2212_v1  ;;  %v895_v24 = vmul.f32 %v664_v20, %v2192_v28  ;;  %v868_v28 = vmul.f32 %v1906_v11, %v2692_v25 }
 0x191   : > { %v870_v11 = vmul.f32 %v1919_v15, %v2694_v26 }
 0x192   : > { %v928_v8 = vadd.f32 %v896_v62, %v864_v40  ;;  %v927_v51 = vadd.f32 %v895_v24, %v863_v48 }
 0x193   : > { %v670_v42 = vpop.permute.xlu1 %669  ;;  %v668_v43 = vpop.permute.xlu0 %667 }
 0x194   : > { %960 = vst [vmem:[%s2411_s24 + $0xc8] sm:$0xff] %v928_v8  ;;  %959 = vst [vmem:[%s2411_s24 + $0xc0] sm:$0xff] %v927_v51  ;;  %v898_v21 = vmul.f32 %v670_v42, %v2210_v0  ;;  %v897_v1 = vmul.f32 %v668_v43, %v2190_v29 }
 0x196   : > { %v930_v10 = vadd.f32 %v898_v21, %v866_v3  ;;  %v929_v36 = vadd.f32 %v897_v1, %v865_v14 }
 0x197   : > { %v674_v34 = vpop.permute.xlu1 %673  ;;  %v672_v52 = vpop.permute.xlu0 %671 }
 0x198   : > { %962 = vst [vmem:[%s2411_s24 + $0xd8] sm:$0xff] %v930_v10  ;;  %961 = vst [vmem:[%s2411_s24 + $0xd0] sm:$0xff] %v929_v36  ;;  %v900_v0 = vmul.f32 %v674_v34, %v2235_v63  ;;  %v899_v29 = vmul.f32 %v672_v52, %v2237_v23 }
 0x19a   : > { %v932_v19 = vadd.f32 %v900_v0, %v868_v28  ;;  %v931_v53 = vadd.f32 %v899_v29, %v867_v9 }
 0x19b   : > { %v678_v22 = vpop.permute.xlu1 %677  ;;  %v676_v6 = vpop.permute.xlu0 %675 }
 0x19c   : > { %964 = vst [vmem:[%s2411_s24 + $0xe8] sm:$0xff] %v932_v19  ;;  %963 = vst [vmem:[%s2411_s24 + $0xe0] sm:$0xff] %v931_v53  ;;  %v902_v63 = vmul.f32 %v678_v22, %v2257_v4  ;;  %v901_v23 = vmul.f32 %v676_v6, %v2259_v5 }
 0x19e   : > { %v934_v44 = vadd.f32 %v902_v63, %v870_v11  ;;  %v933_v31 = vadd.f32 %v901_v23, %v869_v12 }
 0x1a0   : > { %966 = vst [vmem:[%s2411_s24 + $0xf8] sm:$0xff] %v934_v44  ;;  %965 = vst [vmem:[%s2411_s24 + $0xf0] sm:$0xff] %v933_v31 }
 0x1a1   : > { %1473 = shalt.err (!%p1470_p8)
}
 0x1a2   : > { %s1474_s25 = scalar_lea.hbm %s2531_s16, 4096  ;;  %s1478_s29 = scalar_lea.hbm %s2592_s5, 8192 }
 0x1a3   : > { %p1475_p11 = scmp.ne.s32.totalorder %s2531_s16, %s1474_s25  ;;  %p1479_p2 = scmp.lt.u32.totalorder %s2531_s16, %s2592_s5 }
 0x1a4   : > { %p1480_p10 = scmp.lt.u32.totalorder %s1478_s29, %s1474_s25  ;;  %p1482_p4 = scmp.lt.u32.totalorder %s1474_s25, %s2531_s16 }
 0x1a5   : > { %p1476_p13 = pnand %p1475_p11, %p2671_p6 }
 0x1a6   : > { %p1481_p3 = por %p1480_p10, %p1479_p2 }
 0x1a7   : > { %p1477_p0 = pneg %p1476_p13 }
 0x1a8   : > { %p1483_p9 = por %p1482_p4, %p1481_p3 }
 0x1aa   : > { %p1484_p5 = pnand %p1483_p9, %p1477_p0 }
 0x1ac   : > { %1487 = shalt.err (!%p1484_p5)
}
 0x1ad   : > { %1231 = dma.vmem_to_hbm [thread:$0]  (%p2671_p6), %s2533_s15, 4096, %s2531_s16, %s973_s17, %s1568_s3, %s1568_s3, %s1569_s26  }
 0x1ae PF: > { %s1023_s6 = sand.u32 1, %s1538_s18   ;;  %p2696_p7 = scmp.ne.s32.totalorder %s2629_s27, 0 }
 0x1af   : > { %p2697_p12 = scmp.ge.s32.totalorder %s1558_s23, 2  ;;  %s1024_s28 = scalar_lea.sflag [#allocation4], %s1023_s6 }
 0x1b1   : > { %p1249_p1 = pnand %p2697_p12, %p2696_p7 }
 0x1b3   : > { %1529 = dma.done.wait (!%p1249_p1), %s1024_s28, 4096  }
 0x1b4   : > { %1531 = vsyncadd (!%p1249_p1), %s1024_s28, 4294963200  ;;  %s1033_s9 = scalar_lea.sflag [#allocation12], %s1023_s6 }
 0x1b5   : > { %1533 = dma.done.wait (!%p1249_p1), %s1033_s9, 4096  }
 0x1b6   : > { %1535 = vsyncadd (!%p1249_p1), %s1033_s9, 4294963200  ;;  %s29_s23 = sadd.s32 1, %s1558_s23   ;;  %s2698_s13 = sld [smem:[#allocation21_spill]] }
 0x1b7   : > { %p26_p8 = scmp.ge.s32.totalorder %s29_s23, 4   ;;  %s2699_s21 = sld [smem:[#allocation19_spill]] }
 0x1b8   : > { %s2700_s22 = sld [smem:[#allocation20_spill]]  ;;  %s2701_s18 = smov %s1542_s19 }
 0x1b9   : > { %s2702_s19 = smov %s1546_s20  ;;  %28 = sbr.rel (!%p26_p8) target bundleno = 15 (0xf), region = 121 }
 0x1bc   : > { %s2703_s20 = smov %s2698_s13 }
 0x1c0   :  { %1038 = vsyncpa [#allocation3], 1 }
 0x1c1   :  { %1040 = vsyncpa [#allocation3 + $0x1], 1 }
 0x1c2   :  { %1041 = vsyncpa [#allocation6], 1 }
 0x1c3   :  { %1043 = vsyncpa [#allocation6 + $0x1], 1 }
 0x1c4   :  { %1044 = vsyncpa [#allocation9], 1 }
 0x1c5   :  { %1045 = vsyncpa [#allocation4], 1 }
 0x1c6   :  { %1047 = vsyncpa [#allocation4 + $0x1], 1 }
 0x1c7   :  { %1048 = vsyncpa [#allocation12], 1 }
 0x1c8   :  { %1050 = vsyncpa [#allocation12 + $0x1], 1 }

</bundles_post_ra>
